<compile_context>
chip_gen: v7x
topology: tpu7x:2x2x1
jax: 0.10.0
libtpu: 0.0.40
codegen_flags: <defaults>
</compile_context>

<pallas_src>
import functools

import jax
import jax.numpy as jnp
from jax.experimental import pallas as pl
from jax.experimental.pallas import tpu as pltpu


# ----------------------------------------------------------------------------
# Tiling helpers
# ----------------------------------------------------------------------------
def _round_up(x, m):
    return (x + m - 1) // m * m


@functools.lru_cache(maxsize=1)
def _tile_limits():
    """Per-generation (tm_max, tk_max, tn_max, vmem_limit_bytes)."""
    try:
        kind = jax.devices()[0].device_kind.lower()
    except Exception:
        kind = ""
    if "v6" in kind:            # 128 MiB VMEM, 32 MiB scoped default
        return 512, 2048, 1024, 64 * 1024 * 1024
    if "v7" in kind:            # 64 MiB VMEM per TC, 2 TCs
        return 512, 2048, 1024, 44 * 1024 * 1024
    if "v5" in kind:            # 128 MiB VMEM, 16 MiB scoped default
        return 512, 1024, 512, 64 * 1024 * 1024
    return 512, 1024, 512, 32 * 1024 * 1024


def _largest_aligned_divisor(n, cap, align=128):
    """Largest multiple of `align` that divides n and is <= cap (n % align == 0)."""
    if n <= align:
        return n
    best = align
    t = align
    limit = min(cap, n)
    while t <= limit:
        if n % t == 0:
            best = t
        t += align
    return best


def _pad2d(a, rows, cols):
    r, c = a.shape
    if r == rows and c == cols:
        return a
    return jnp.pad(a, ((0, rows - r), (0, cols - c)))


# ----------------------------------------------------------------------------
# Weight preparation (runs ONCE at load time — hoisted out of the hot path)
# ----------------------------------------------------------------------------
def prepare_linear(w_t, b, *, k_pad=None):
    """w_t: [K, N] (columns = output features).  Pads K to k_pad (caller
    guarantees the activation already has k_pad columns) and N to a multiple
    of 128; picks tk/tn as exact aligned divisors; streams the weight bf16."""
    _, tk_max, tn_max, _ = _tile_limits()
    K, N = w_t.shape
    Kp = k_pad if k_pad is not None else _round_up(K, 128)
    Np_ = _round_up(N, 128)
    tk = _largest_aligned_divisor(Kp, tk_max)
    tn = _largest_aligned_divisor(Np_, tn_max)
    w = _pad2d(w_t.astype(jnp.float32), Kp, Np_).astype(jnp.bfloat16)
    bp = _pad2d(b.reshape(1, N).astype(jnp.float32), 1, Np_)
    return {"w": w, "b": bp, "k": K, "n": N, "tk": tk, "tn": tn}


def prepare_glcc_params(params, P):
    """Hoist all weight transposes / layout reorders / padding / bf16 casts."""
    wc = params["conv1_w"][:, :, 0, 0]                 # [Cout, Cin]
    Cout, Cin = wc.shape
    assert Cin % 2 == 0
    c_half = Cin // 2
    k_half = _round_up(c_half, 128)                    # per-branch channel pad
    cout_pad = _round_up(Cout, 128)                    # lane-aligned conv out
    wc_t = wc.T.astype(jnp.float32)                    # [Cin, Cout]
    wg = _pad2d(wc_t[:c_half], k_half, cout_pad).astype(jnp.bfloat16)
    wl = _pad2d(wc_t[c_half:], k_half, cout_pad).astype(jnp.bfloat16)
    bc = _pad2d(params["conv1_b"].reshape(1, Cout).astype(jnp.float32),
                1, cout_pad)
    conv1 = {"wg": wg, "wl": wl, "b": bc}

    # fc1: PyTorch flattens NCHW as (c, h, w); our conv1 activations flatten as
    # (h, w, c_pad).  Reorder / pad the weight columns once here.
    w1 = params["fc1_w"]                               # [feat, Cout*P*P]
    feat = w1.shape[0]
    w1_hwc = w1.reshape(feat, Cout, P, P).transpose(0, 2, 3, 1)   # [feat,P,P,Cout]
    w1_hwc = jnp.pad(w1_hwc, ((0, 0), (0, 0), (0, 0), (0, cout_pad - Cout)))
    K1 = P * P * cout_pad                              # multiple of 128
    fc1 = prepare_linear(w1_hwc.reshape(feat, K1).T, params["fc1_b"], k_pad=K1)

    feat_pad = fc1["w"].shape[1]                       # fc1 padded output width
    fc2 = prepare_linear(params["fc2_w"].T, params["fc2_b"], k_pad=feat_pad)
    np2 = fc2["w"].shape[1]

    # fc_out is folded into fc2's epilogue; pad its 4-wide output to 128 lanes
    # and its K dim (rows) to fc2's padded output width.
    wo_t = params["fc_out_w"].T                        # [feat, 4]
    n_out = wo_t.shape[1]
    wo = _pad2d(wo_t.astype(jnp.float32), np2, 128).astype(jnp.bfloat16)
    bo = _pad2d(params["fc_out_b"].reshape(1, n_out).astype(jnp.float32), 1, 128)
    return {"conv1": conv1, "fc1": fc1, "fc2": fc2,
            "fc_out_w": wo, "fc_out_b": bo,
            "n_out": n_out, "cout_pad": cout_pad, "k_half": k_half, "P": P}


# ----------------------------------------------------------------------------
# Kernels
# ----------------------------------------------------------------------------
def _conv1_kernel(xg_ref, xl_ref, wg_ref, wl_ref, b_ref, o_ref):
    """1x1 conv as per-pixel matmul over channels, split across the two
    pooled branches (no concat).  Weight blocks have constant index across the
    M grid, so they are DMA'd once and stay VMEM-resident."""
    acc = jnp.dot(xg_ref[...], wg_ref[...], preferred_element_type=jnp.float32)
    acc += jnp.dot(xl_ref[...], wl_ref[...], preferred_element_type=jnp.float32)
    o_ref[...] = jnp.maximum(acc + b_ref[...], 0.0).astype(o_ref.dtype)


def _linear_kernel(x_ref, w_ref, b_ref, o_ref, acc_ref, *, apply_relu):
    """Tiled o = relu?(x @ w + b) with f32 K-reduction accumulator."""
    k = pl.program_id(2)

    @pl.when(k == 0)
    def _():
        acc_ref[...] = jnp.zeros_like(acc_ref)

    acc_ref[...] += jnp.dot(x_ref[...], w_ref[...],
                            preferred_element_type=jnp.float32)

    @pl.when(k == pl.num_programs(2) - 1)
    def _():
        r = acc_ref[...] + b_ref[...]
        if apply_relu:
            r = jnp.maximum(r, 0.0)
        o_ref[...] = r.astype(o_ref.dtype)


def _fc2_fcout_kernel(x_ref, w2_ref, b2_ref, wo_ref, o_ref, acc2_ref):
    """Fused fc2 + ReLU + fc_out.  Writes a per-j partial fc_out result
    (o[j, i_block, :] = relu(x@w2_j + b2_j) @ wo_j), so the fc2 N axis is
    fully parallel (v7x megacore) and only tiny [nj, M, 128] partials hit HBM.
    The partials are summed (and fc_out bias added) by a trivial XLA reduce."""
    k = pl.program_id(2)

    @pl.when(k == 0)
    def _():
        acc2_ref[...] = jnp.zeros_like(acc2_ref)

    acc2_ref[...] += jnp.dot(x_ref[...], w2_ref[...],
                             preferred_element_type=jnp.float32)

    @pl.when(k == pl.num_programs(2) - 1)
    def _():
        h = jnp.maximum(acc2_ref[...] + b2_ref[...], 0.0)
        # TODO(synk): nn.Dropout()(x) in the reference would apply here; we use
        # the deterministic identity (inference behaviour).
        o_ref[0] = jnp.dot(h.astype(wo_ref.dtype), wo_ref[...],
                           preferred_element_type=jnp.float32)


# ----------------------------------------------------------------------------
# Wrappers (no padding / slicing here — padded shapes flow between layers)
# ----------------------------------------------------------------------------
def pallas_conv1(xg, xl, prep, *, tm):
    M, Kh = xg.shape
    Kp, Cp = prep["wg"].shape
    assert Kh == Kp and xl.shape == (M, Kh) and M % tm == 0
    _, _, _, vmem_limit = _tile_limits()

    flops = 4 * M * Kp * Cp
    bytes_accessed = ((xg.size + xl.size) * 2
                      + (prep["wg"].size + prep["wl"].size) * 2
                      + prep["b"].size * 4 + M * Cp * 2)

    return pl.pallas_call(
        _conv1_kernel,
        out_shape=jax.ShapeDtypeStruct((M, Cp), jnp.bfloat16),
        grid_spec=pltpu.PrefetchScalarGridSpec(
            num_scalar_prefetch=0,
            grid=(M // tm,),
            in_specs=[
                pl.BlockSpec((tm, Kp), lambda i: (i, 0)),
                pl.BlockSpec((tm, Kp), lambda i: (i, 0)),
                pl.BlockSpec((Kp, Cp), lambda i: (0, 0)),   # VMEM-resident
                pl.BlockSpec((Kp, Cp), lambda i: (0, 0)),   # VMEM-resident
                pl.BlockSpec((1, Cp), lambda i: (0, 0)),
            ],
            out_specs=pl.BlockSpec((tm, Cp), lambda i: (i, 0)),
        ),
        compiler_params=pltpu.CompilerParams(
            dimension_semantics=("parallel",),
            vmem_limit_bytes=vmem_limit),
        cost_estimate=pl.CostEstimate(flops=flops, transcendentals=0,
                                      bytes_accessed=bytes_accessed),
    )(xg, xl, prep["wg"], prep["wl"], prep["b"])


def pallas_linear(x, prep, *, apply_relu, tm, out_dtype=jnp.bfloat16):
    M, K = x.shape
    Kp, Np_ = prep["w"].shape
    assert K == Kp and M % tm == 0, (x.shape, prep["w"].shape, tm)
    tk, tn = prep["tk"], prep["tn"]
    _, _, _, vmem_limit = _tile_limits()

    grid = (M // tm, Np_ // tn, Kp // tk)
    flops = 2 * M * Kp * Np_
    out_item = 2 if out_dtype == jnp.bfloat16 else 4
    bytes_accessed = (x.size * 2 + prep["w"].size * 2 + prep["b"].size * 4
                      + M * Np_ * out_item)

    return pl.pallas_call(
        functools.partial(_linear_kernel, apply_relu=apply_relu),
        out_shape=jax.ShapeDtypeStruct((M, Np_), out_dtype),
        grid_spec=pltpu.PrefetchScalarGridSpec(
            num_scalar_prefetch=0,
            grid=grid,
            in_specs=[
                pl.BlockSpec((tm, tk), lambda i, j, k: (i, k)),
                pl.BlockSpec((tk, tn), lambda i, j, k: (k, j)),
                pl.BlockSpec((1, tn), lambda i, j, k: (0, j)),
            ],
            out_specs=pl.BlockSpec((tm, tn), lambda i, j, k: (i, j)),
            scratch_shapes=[pltpu.VMEM((tm, tn), jnp.float32)],
        ),
        compiler_params=pltpu.CompilerParams(
            dimension_semantics=("parallel", "parallel", "arbitrary"),
            vmem_limit_bytes=vmem_limit),
        cost_estimate=pl.CostEstimate(flops=flops, transcendentals=0,
                                      bytes_accessed=bytes_accessed),
    )(x, prep["w"], prep["b"])


def pallas_fc2_fcout(x, fc2, wo, bo, *, tm):
    M, K = x.shape
    Kp, Np2 = fc2["w"].shape
    assert K == Kp and M % tm == 0, (x.shape, fc2["w"].shape, tm)
    tk, tn = fc2["tk"], fc2["tn"]
    n_out_pad = wo.shape[1]
    nj = Np2 // tn
    _, _, _, vmem_limit = _tile_limits()

    grid = (M // tm, nj, Kp // tk)
    flops = 2 * M * Kp * Np2 + 2 * M * Np2 * n_out_pad
    bytes_accessed = (x.size * 2 + fc2["w"].size * 2 + wo.size * 2
                      + fc2["b"].size * 4 + nj * M * n_out_pad * 4)

    partials = pl.pallas_call(
        _fc2_fcout_kernel,
        out_shape=jax.ShapeDtypeStruct((nj, M, n_out_pad), jnp.float32),
        grid_spec=pltpu.PrefetchScalarGridSpec(
            num_scalar_prefetch=0,
            grid=grid,
            in_specs=[
                pl.BlockSpec((tm, tk), lambda i, j, k: (i, k)),
                pl.BlockSpec((tk, tn), lambda i, j, k: (k, j)),
                pl.BlockSpec((1, tn), lambda i, j, k: (0, j)),
                pl.BlockSpec((tn, n_out_pad), lambda i, j, k: (j, 0)),
            ],
            out_specs=pl.BlockSpec((1, tm, n_out_pad), lambda i, j, k: (j, i, 0)),
            scratch_shapes=[pltpu.VMEM((tm, tn), jnp.float32)],
        ),
        compiler_params=pltpu.CompilerParams(
            dimension_semantics=("parallel", "parallel", "arbitrary"),
            vmem_limit_bytes=vmem_limit),
        cost_estimate=pl.CostEstimate(flops=flops, transcendentals=0,
                                      bytes_accessed=bytes_accessed),
    )(x, fc2["w"], fc2["b"], wo)

    # Tiny XLA reduce over the nj partials + fc_out bias ([nj, M, 128] f32).
    return partials.sum(axis=0) + bo


# ----------------------------------------------------------------------------
# Head
# ----------------------------------------------------------------------------
def _to_rows(pooled, n_pad, k_pad):
    """NCHW pooled ROI features -> bf16 (n,h,w)-ordered row matrix [n_pad*P*P, k_pad]."""
    n, c, P, _ = pooled.shape
    p = pooled.astype(jnp.bfloat16)            # cast BEFORE the layout glue
    if n_pad != n:
        p = jnp.pad(p, ((0, n_pad - n), (0, 0), (0, 0), (0, 0)))
    r = p.transpose(0, 2, 3, 1).reshape(n_pad * P * P, c)
    if k_pad != c:
        r = jnp.pad(r, ((0, 0), (0, k_pad - c)))
    return r


def glcc_head(pooled_feat_g, pooled_feat_l, prep):
    """GLCC classification head.

    pooled_feat_g / pooled_feat_l: [Np, C_half, P, P] (NCHW ROI-pooled
    features, as in the PyTorch module).  Returns glcc_out: [Np, 4].
    """
    n_props, c_half, P, P2 = pooled_feat_g.shape
    assert P == P2 == prep["P"]
    assert pooled_feat_l.shape == pooled_feat_g.shape

    tm_max, _, _, _ = _tile_limits()
    if _round_up(n_props, 8) <= tm_max:
        tm_fc = _round_up(n_props, 8)          # single M tile for fc1/fc2
    else:
        tm_fc = 256
    np_pad = _round_up(n_props, tm_fc)
    tm_conv = 8 * P * P                        # divides np_pad * P * P exactly

    # glcc_conv1 (1x1 conv) + ReLU, with the torch.cat(dim=1) folded into two
    # split weight halves.  Rows ordered (n, h, w), columns = padded out chans.
    # TODO(synk): the NCHW->(n,h,w,c) transpose still runs as (bf16) XLA glue;
    # fusing it into the conv1 kernel would remove that activation round trip.
    xg = _to_rows(pooled_feat_g, np_pad, prep["k_half"])
    xl = _to_rows(pooled_feat_l, np_pad, prep["k_half"])
    y = pallas_conv1(xg, xl, prep["conv1"], tm=tm_conv)    # [np_pad*P*P, cout_pad]

    # TODO(synk): conv1's output still round-trips HBM before fc1; a full
    # conv1+fc1 fusion (activation VMEM-resident) would save that traffic.
    y = y.reshape(np_pad, P * P * prep["cout_pad"])        # pure row reshape

    # glcc_fc1 + ReLU  (padded shapes flow straight into fc2, no slice/re-pad)
    y = pallas_linear(y, prep["fc1"], apply_relu=True, tm=tm_fc)
    # TODO(synk): nn.Dropout()(x) after fc1/fc2 in the reference is replaced by
    # the deterministic identity (inference behaviour).

    # glcc_fc2 + ReLU + glcc_fc_out, fused in one kernel.
    out = pallas_fc2_fcout(y, prep["fc2"], prep["fc_out_w"], prep["fc_out_b"],
                           tm=tm_fc)
    return out[:n_props, :prep["n_out"]]


# ----------------------------------------------------------------------------
# Pure-JAX reference (bf16 operands, f32 accumulation, like the kernels)
# ----------------------------------------------------------------------------
def glcc_head_ref(pooled_feat_g, pooled_feat_l, params):
    f = lambda a: a.astype(jnp.bfloat16).astype(jnp.float32)
    x = jnp.concatenate([pooled_feat_g, pooled_feat_l], axis=1)   # NCHW
    wc = params["conv1_w"][:, :, 0, 0]
    y = jnp.einsum("nchw,oc->nohw", f(x), f(wc)) \
        + params["conv1_b"][None, :, None, None]
    y = jnp.maximum(y, 0.0)
    y = y.reshape(y.shape[0], -1)                                  # (c,h,w) flatten
    y = jnp.maximum(f(y) @ f(params["fc1_w"].T) + params["fc1_b"], 0.0)
    y = jnp.maximum(f(y) @ f(params["fc2_w"].T) + params["fc2_b"], 0.0)
    return f(y) @ f(params["fc_out_w"].T) + params["fc_out_b"]


if __name__ == "__main__":
    key = jax.random.PRNGKey(0)
    ks = jax.random.split(key, 8)

    # Small, structure-consistent stand-ins for the real GLCC dims
    # (fc_num=2048/512, conv_out=512, feat=4096, ~hundreds of proposals).
    C_half = 32          # per-branch ROI channels -> fc_num = 64
    conv_out = 64        # stands for 512
    P = 7                # roipool
    feat = 128           # stands for 4096
    n_props = 2          # proposals fed to the head

    fc_num = 2 * C_half
    pooled_g = jax.random.normal(ks[0], (n_props, C_half, P, P), jnp.float32)
    pooled_l = jax.random.normal(ks[1], (n_props, C_half, P, P), jnp.float32)

    # Deterministic parameter init matching _init_weights: N(0, 0.01), zero bias.
    params = {
        "conv1_w": 0.01 * jax.random.normal(ks[2], (conv_out, fc_num, 1, 1), jnp.float32),
        "conv1_b": jnp.zeros((conv_out,), jnp.float32),
        "fc1_w": 0.01 * jax.random.normal(ks[3], (feat, conv_out * P * P), jnp.float32),
        "fc1_b": jnp.zeros((feat,), jnp.float32),
        "fc2_w": 0.01 * jax.random.normal(ks[4], (feat, feat), jnp.float32),
        "fc2_b": jnp.zeros((feat,), jnp.float32),
        "fc_out_w": 0.01 * jax.random.normal(ks[5], (4, feat), jnp.float32),
        "fc_out_b": jnp.zeros((4,), jnp.float32),
    }

    # Weight layout work hoisted out of the forward pass (runs once).
    prep = prepare_glcc_params(params, P)

    head = jax.jit(lambda g, l: glcc_head(g, l, prep))
    out = jax.block_until_ready(head(pooled_g, pooled_l))
    assert out.shape == (n_props, 4), out.shape

    ref = glcc_head_ref(pooled_g, pooled_l, params)
    assert jnp.allclose(out, ref, atol=2e-5, rtol=2e-2), (out, ref)

    print("KERNEL_OK")
</pallas_src>

<mosaic_0001>
module attributes {stable_mosaic.version = 11 : i64} {
  func.func @_conv1_kernel(%arg0: i32, %arg1: memref<392x128xbf16, #tpu.memory_space<vmem>>, %arg2: memref<392x128xbf16, #tpu.memory_space<vmem>>, %arg3: memref<128x128xbf16, #tpu.memory_space<vmem>>, %arg4: memref<128x128xbf16, #tpu.memory_space<vmem>>, %arg5: memref<1x128xf32, #tpu.memory_space<vmem>>, %arg6: memref<392x128xbf16, #tpu.memory_space<vmem>>) attributes {dimension_semantics = [#tpu.dimension_semantics<parallel>], iteration_bounds = array<i64: 1>, scalar_prefetch = 0 : i64, scratch_operands = 0 : i64, tpu.core_type = #tpu.core_type<tc>, window_params = [{transform_indices = @transform_0, window_bounds = array<i64: 392, 128>}, {transform_indices = @transform_1, window_bounds = array<i64: 392, 128>}, {pipeline_mode = #tpu.pipeline_mode<synchronous>, transform_indices = @transform_2, window_bounds = array<i64: 128, 128>}, {pipeline_mode = #tpu.pipeline_mode<synchronous>, transform_indices = @transform_3, window_bounds = array<i64: 128, 128>}, {pipeline_mode = #tpu.pipeline_mode<synchronous>, transform_indices = @transform_4, window_bounds = array<i64: 1, 128>}, {transform_indices = @transform_5, window_bounds = array<i64: 392, 128>}]} {
    %c0 = arith.constant 0 : index
    %c0_0 = arith.constant 0 : index
    %0 = vector.load %arg1[%c0, %c0_0] : memref<392x128xbf16, #tpu.memory_space<vmem>>, vector<392x128xbf16>
    %c0_1 = arith.constant 0 : index
    %c0_2 = arith.constant 0 : index
    %1 = vector.load %arg3[%c0_1, %c0_2] : memref<128x128xbf16, #tpu.memory_space<vmem>>, vector<128x128xbf16>
    %cst = arith.constant dense<0.000000e+00> : vector<392x128xf32>
    %2 = tpu.matmul %0, %1, %cst {dimension_numbers = #tpu.dot_dimension_numbers<[1], [0], [0], [1], [0, 0, 1, 1], [], []>} : vector<392x128xbf16>, vector<128x128xbf16>, vector<392x128xf32> -> vector<392x128xf32>
    %c0_3 = arith.constant 0 : index
    %c0_4 = arith.constant 0 : index
    %3 = vector.load %arg2[%c0_3, %c0_4] : memref<392x128xbf16, #tpu.memory_space<vmem>>, vector<392x128xbf16>
    %c0_5 = arith.constant 0 : index
    %c0_6 = arith.constant 0 : index
    %4 = vector.load %arg4[%c0_5, %c0_6] : memref<128x128xbf16, #tpu.memory_space<vmem>>, vector<128x128xbf16>
    %cst_7 = arith.constant dense<0.000000e+00> : vector<392x128xf32>
    %5 = tpu.matmul %3, %4, %cst_7 {dimension_numbers = #tpu.dot_dimension_numbers<[1], [0], [0], [1], [0, 0, 1, 1], [], []>} : vector<392x128xbf16>, vector<128x128xbf16>, vector<392x128xf32> -> vector<392x128xf32>
    %6 = arith.addf %2, %5 : vector<392x128xf32>
    %c0_8 = arith.constant 0 : index
    %c0_9 = arith.constant 0 : index
    %7 = vector.load %arg5[%c0_8, %c0_9] : memref<1x128xf32, #tpu.memory_space<vmem>>, vector<1x128xf32>
    %8 = vector.broadcast %7 : vector<1x128xf32> to vector<392x128xf32>
    %9 = arith.addf %6, %8 : vector<392x128xf32>
    %cst_10 = arith.constant 0.000000e+00 : f32
    %10 = vector.broadcast %cst_10 : f32 to vector<392x128xf32>
    %11 = arith.maximumf %9, %10 : vector<392x128xf32>
    %12 = arith.truncf %11 : vector<392x128xf32> to vector<392x128xbf16>
    %c0_11 = arith.constant 0 : index
    %c0_12 = arith.constant 0 : index
    %13 = vector.load %arg6[%c0_11, %c0_12] : memref<392x128xbf16, #tpu.memory_space<vmem>>, vector<392x128xbf16>
    tpu.vector_store %arg6[%c0_11, %c0_12], %12 {strides = array<i32>} : memref<392x128xbf16, #tpu.memory_space<vmem>>, vector<392x128xbf16>,
    return
  }
  func.func @transform_0(%arg0: i32) -> (i32, i32) {
    %c0_i32 = arith.constant 0 : i32
    %c0_i32_0 = arith.constant 0 : i32
    return %arg0, %c0_i32 : i32, i32
  }
  func.func @transform_1(%arg0: i32) -> (i32, i32) {
    %c0_i32 = arith.constant 0 : i32
    %c0_i32_0 = arith.constant 0 : i32
    return %arg0, %c0_i32 : i32, i32
  }
  func.func @transform_2(%arg0: i32) -> (i32, i32) {
    %c0_i32 = arith.constant 0 : i32
    %c0_i32_0 = arith.constant 0 : i32
    %c0_i32_1 = arith.constant 0 : i32
    return %c0_i32, %c0_i32_0 : i32, i32
  }
  func.func @transform_3(%arg0: i32) -> (i32, i32) {
    %c0_i32 = arith.constant 0 : i32
    %c0_i32_0 = arith.constant 0 : i32
    %c0_i32_1 = arith.constant 0 : i32
    return %c0_i32, %c0_i32_0 : i32, i32
  }
  func.func @transform_4(%arg0: i32) -> (i32, i32) {
    %c0_i32 = arith.constant 0 : i32
    %c0_i32_0 = arith.constant 0 : i32
    %c0_i32_1 = arith.constant 0 : i32
    return %c0_i32, %c0_i32_0 : i32, i32
  }
  func.func @transform_5(%arg0: i32) -> (i32, i32) {
    %c0_i32 = arith.constant 0 : i32
    %c0_i32_0 = arith.constant 0 : i32
    return %arg0, %c0_i32 : i32, i32
  }
}

module attributes {stable_mosaic.version = 11 : i64} {
  func.func @_linear_kernel(%arg0: i32, %arg1: i32, %arg2: i32, %arg3: memref<8x896xbf16, #tpu.memory_space<vmem>>, %arg4: memref<896x128xbf16, #tpu.memory_space<vmem>>, %arg5: memref<1x128xf32, #tpu.memory_space<vmem>>, %arg6: memref<8x128xbf16, #tpu.memory_space<vmem>>, %arg7: memref<8x128xf32, #tpu.memory_space<vmem>>) attributes {dimension_semantics = [#tpu.dimension_semantics<parallel>, #tpu.dimension_semantics<parallel>, #tpu.dimension_semantics<arbitrary>], iteration_bounds = array<i64: 1, 1, 7>, scalar_prefetch = 0 : i64, scratch_operands = 1 : i64, tpu.core_type = #tpu.core_type<tc>, window_params = [{transform_indices = @transform_0, window_bounds = array<i64: 8, 896>}, {transform_indices = @transform_1, window_bounds = array<i64: 896, 128>}, {transform_indices = @transform_2, window_bounds = array<i64: 1, 128>}, {transform_indices = @transform_3, window_bounds = array<i64: 8, 128>}]} {
    %c0_i32 = arith.constant 0 : i32
    %0 = arith.cmpi eq, %arg2, %c0_i32 : i32
    %1 = arith.extui %0 : i1 to i32
    %c0_i32_0 = arith.constant 0 : i32
    %2 = arith.cmpi ne, %1, %c0_i32_0 : i32
    scf.if %2 {
      %cst_9 = arith.constant 0.000000e+00 : f32
      %12 = vector.broadcast %cst_9 : f32 to vector<8x128xf32>
      %c0_10 = arith.constant 0 : index
      %c0_11 = arith.constant 0 : index
      %13 = vector.load %arg7[%c0_10, %c0_11] : memref<8x128xf32, #tpu.memory_space<vmem>>, vector<8x128xf32>
      tpu.vector_store %arg7[%c0_10, %c0_11], %12 {strides = array<i32>} : memref<8x128xf32, #tpu.memory_space<vmem>>, vector<8x128xf32>,
    } else {
    }
    %c0 = arith.constant 0 : index
    %c0_1 = arith.constant 0 : index
    %3 = vector.load %arg7[%c0, %c0_1] : memref<8x128xf32, #tpu.memory_space<vmem>>, vector<8x128xf32>
    %c0_2 = arith.constant 0 : index
    %c0_3 = arith.constant 0 : index
    %4 = vector.load %arg3[%c0_2, %c0_3] : memref<8x896xbf16, #tpu.memory_space<vmem>>, vector<8x896xbf16>
    %c0_4 = arith.constant 0 : index
    %c0_5 = arith.constant 0 : index
    %5 = vector.load %arg4[%c0_4, %c0_5] : memref<896x128xbf16, #tpu.memory_space<vmem>>, vector<896x128xbf16>
    %cst = arith.constant dense<0.000000e+00> : vector<8x128xf32>
    %6 = tpu.matmul %4, %5, %cst {dimension_numbers = #tpu.dot_dimension_numbers<[1], [0], [0], [1], [0, 0, 1, 1], [], []>} : vector<8x896xbf16>, vector<896x128xbf16>, vector<8x128xf32> -> vector<8x128xf32>
    %7 = arith.addf %3, %6 : vector<8x128xf32>
    %c0_6 = arith.constant 0 : index
    %c0_7 = arith.constant 0 : index
    %8 = vector.load %arg7[%c0_6, %c0_7] : memref<8x128xf32, #tpu.memory_space<vmem>>, vector<8x128xf32>
    tpu.vector_store %arg7[%c0_6, %c0_7], %7 {strides = array<i32>} : memref<8x128xf32, #tpu.memory_space<vmem>>, vector<8x128xf32>,
    %c6_i32 = arith.constant 6 : i32
    %9 = arith.cmpi eq, %arg2, %c6_i32 : i32
    %10 = arith.extui %9 : i1 to i32
    %c0_i32_8 = arith.constant 0 : i32
    %11 = arith.cmpi ne, %10, %c0_i32_8 : i32
    scf.if %11 {
      %c0_9 = arith.constant 0 : index
      %c0_10 = arith.constant 0 : index
      %12 = vector.load %arg7[%c0_9, %c0_10] : memref<8x128xf32, #tpu.memory_space<vmem>>, vector<8x128xf32>
      %c0_11 = arith.constant 0 : index
      %c0_12 = arith.constant 0 : index
      %13 = vector.load %arg5[%c0_11, %c0_12] : memref<1x128xf32, #tpu.memory_space<vmem>>, vector<1x128xf32>
      %14 = vector.broadcast %13 : vector<1x128xf32> to vector<8x128xf32>
      %15 = arith.addf %12, %14 : vector<8x128xf32>
      %cst_13 = arith.constant 0.000000e+00 : f32
      %16 = vector.broadcast %cst_13 : f32 to vector<8x128xf32>
      %17 = arith.maximumf %15, %16 : vector<8x128xf32>
      %18 = arith.truncf %17 : vector<8x128xf32> to vector<8x128xbf16>
      %c0_14 = arith.constant 0 : index
      %c0_15 = arith.constant 0 : index
      %19 = vector.load %arg6[%c0_14, %c0_15] : memref<8x128xbf16, #tpu.memory_space<vmem>>, vector<8x128xbf16>
      tpu.vector_store %arg6[%c0_14, %c0_15], %18 {strides = array<i32>} : memref<8x128xbf16, #tpu.memory_space<vmem>>, vector<8x128xbf16>,
    } else {
    }
    return
  }
  func.func @transform_0(%arg0: i32, %arg1: i32, %arg2: i32) -> (i32, i32) {
    %c0_i32 = arith.constant 0 : i32
    return %arg0, %arg2 : i32, i32
  }
  func.func @transform_1(%arg0: i32, %arg1: i32, %arg2: i32) -> (i32, i32) {
    %c0_i32 = arith.constant 0 : i32
    return %arg2, %arg1 : i32, i32
  }
  func.func @transform_2(%arg0: i32, %arg1: i32, %arg2: i32) -> (i32, i32) {
    %c0_i32 = arith.constant 0 : i32
    %c0_i32_0 = arith.constant 0 : i32
    return %c0_i32, %arg1 : i32, i32
  }
  func.func @transform_3(%arg0: i32, %arg1: i32, %arg2: i32) -> (i32, i32) {
    %c0_i32 = arith.constant 0 : i32
    return %arg0, %arg1 : i32, i32
  }
}

module attributes {stable_mosaic.version = 11 : i64} {
  func.func @_fc2_fcout_kernel(%arg0: i32, %arg1: i32, %arg2: i32, %arg3: memref<8x128xbf16, #tpu.memory_space<vmem>>, %arg4: memref<128x128xbf16, #tpu.memory_space<vmem>>, %arg5: memref<1x128xf32, #tpu.memory_space<vmem>>, %arg6: memref<128x128xbf16, #tpu.memory_space<vmem>>, %arg7: memref<1x8x128xf32, #tpu.memory_space<vmem>>, %arg8: memref<8x128xf32, #tpu.memory_space<vmem>>) attributes {dimension_semantics = [#tpu.dimension_semantics<parallel>, #tpu.dimension_semantics<parallel>, #tpu.dimension_semantics<arbitrary>], iteration_bounds = array<i64: 1, 1, 1>, scalar_prefetch = 0 : i64, scratch_operands = 1 : i64, tpu.core_type = #tpu.core_type<tc>, window_params = [{transform_indices = @transform_0, window_bounds = array<i64: 8, 128>}, {transform_indices = @transform_1, window_bounds = array<i64: 128, 128>}, {transform_indices = @transform_2, window_bounds = array<i64: 1, 128>}, {transform_indices = @transform_3, window_bounds = array<i64: 128, 128>}, {transform_indices = @transform_4, window_bounds = array<i64: 1, 8, 128>}]} {
    %c0_i32 = arith.constant 0 : i32
    %0 = arith.cmpi eq, %arg2, %c0_i32 : i32
    %1 = arith.extui %0 : i1 to i32
    %c0_i32_0 = arith.constant 0 : i32
    %2 = arith.cmpi ne, %1, %c0_i32_0 : i32
    scf.if %2 {
      %cst_10 = arith.constant 0.000000e+00 : f32
      %12 = vector.broadcast %cst_10 : f32 to vector<8x128xf32>
      %c0_11 = arith.constant 0 : index
      %c0_12 = arith.constant 0 : index
      %13 = vector.load %arg8[%c0_11, %c0_12] : memref<8x128xf32, #tpu.memory_space<vmem>>, vector<8x128xf32>
      tpu.vector_store %arg8[%c0_11, %c0_12], %12 {strides = array<i32>} : memref<8x128xf32, #tpu.memory_space<vmem>>, vector<8x128xf32>,
    } else {
    }
    %c0 = arith.constant 0 : index
    %c0_1 = arith.constant 0 : index
    %3 = vector.load %arg8[%c0, %c0_1] : memref<8x128xf32, #tpu.memory_space<vmem>>, vector<8x128xf32>
    %c0_2 = arith.constant 0 : index
    %c0_3 = arith.constant 0 : index
    %4 = vector.load %arg3[%c0_2, %c0_3] : memref<8x128xbf16, #tpu.memory_space<vmem>>, vector<8x128xbf16>
    %c0_4 = arith.constant 0 : index
    %c0_5 = arith.constant 0 : index
    %5 = vector.load %arg4[%c0_4, %c0_5] : memref<128x128xbf16, #tpu.memory_space<vmem>>, vector<128x128xbf16>
    %cst = arith.constant dense<0.000000e+00> : vector<8x128xf32>
    %6 = tpu.matmul %4, %5, %cst {dimension_numbers = #tpu.dot_dimension_numbers<[1], [0], [0], [1], [0, 0, 1, 1], [], []>} : vector<8x128xbf16>, vector<128x128xbf16>, vector<8x128xf32> -> vector<8x128xf32>
    %7 = arith.addf %3, %6 : vector<8x128xf32>
    %c0_6 = arith.constant 0 : index
    %c0_7 = arith.constant 0 : index
    %8 = vector.load %arg8[%c0_6, %c0_7] : memref<8x128xf32, #tpu.memory_space<vmem>>, vector<8x128xf32>
    tpu.vector_store %arg8[%c0_6, %c0_7], %7 {strides = array<i32>} : memref<8x128xf32, #tpu.memory_space<vmem>>, vector<8x128xf32>,
    %c0_i32_8 = arith.constant 0 : i32
    %9 = arith.cmpi eq, %arg2, %c0_i32_8 : i32
    %10 = arith.extui %9 : i1 to i32
    %c0_i32_9 = arith.constant 0 : i32
    %11 = arith.cmpi ne, %10, %c0_i32_9 : i32
    scf.if %11 {
      %c0_10 = arith.constant 0 : index
      %c0_11 = arith.constant 0 : index
      %12 = vector.load %arg8[%c0_10, %c0_11] : memref<8x128xf32, #tpu.memory_space<vmem>>, vector<8x128xf32>
      %c0_12 = arith.constant 0 : index
      %c0_13 = arith.constant 0 : index
      %13 = vector.load %arg5[%c0_12, %c0_13] : memref<1x128xf32, #tpu.memory_space<vmem>>, vector<1x128xf32>
      %14 = vector.broadcast %13 : vector<1x128xf32> to vector<8x128xf32>
      %15 = arith.addf %12, %14 : vector<8x128xf32>
      %cst_14 = arith.constant 0.000000e+00 : f32
      %16 = vector.broadcast %cst_14 : f32 to vector<8x128xf32>
      %17 = arith.maximumf %15, %16 : vector<8x128xf32>
      %18 = arith.truncf %17 : vector<8x128xf32> to vector<8x128xbf16>
      %c0_15 = arith.constant 0 : index
      %c0_16 = arith.constant 0 : index
      %19 = vector.load %arg6[%c0_15, %c0_16] : memref<128x128xbf16, #tpu.memory_space<vmem>>, vector<128x128xbf16>
      %cst_17 = arith.constant dense<0.000000e+00> : vector<8x128xf32>
      %20 = tpu.matmul %18, %19, %cst_17 {dimension_numbers = #tpu.dot_dimension_numbers<[1], [0], [0], [1], [0, 0, 1, 1], [], []>} : vector<8x128xbf16>, vector<128x128xbf16>, vector<8x128xf32> -> vector<8x128xf32>
      %c0_18 = arith.constant 0 : index
      %c0_19 = arith.constant 0 : index
      %c0_20 = arith.constant 0 : index
      %21 = vector.load %arg7[%c0_18, %c0_19, %c0_20] : memref<1x8x128xf32, #tpu.memory_space<vmem>>, vector<1x8x128xf32>
      %22 = vector.shape_cast %21 : vector<1x8x128xf32> to vector<8x128xf32>
      %23 = vector.shape_cast %20 : vector<8x128xf32> to vector<1x8x128xf32>
      tpu.vector_store %arg7[%c0_18, %c0_19, %c0_20], %23 {strides = array<i32>} : memref<1x8x128xf32, #tpu.memory_space<vmem>>, vector<1x8x128xf32>,
    } else {
    }
    return
  }
  func.func @transform_0(%arg0: i32, %arg1: i32, %arg2: i32) -> (i32, i32) {
    %c0_i32 = arith.constant 0 : i32
    return %arg0, %arg2 : i32, i32
  }
  func.func @transform_1(%arg0: i32, %arg1: i32, %arg2: i32) -> (i32, i32) {
    %c0_i32 = arith.constant 0 : i32
    return %arg2, %arg1 : i32, i32
  }
  func.func @transform_2(%arg0: i32, %arg1: i32, %arg2: i32) -> (i32, i32) {
    %c0_i32 = arith.constant 0 : i32
    %c0_i32_0 = arith.constant 0 : i32
    return %c0_i32, %arg1 : i32, i32
  }
  func.func @transform_3(%arg0: i32, %arg1: i32, %arg2: i32) -> (i32, i32) {
    %c0_i32 = arith.constant 0 : i32
    %c0_i32_0 = arith.constant 0 : i32
    return %arg1, %c0_i32 : i32, i32
  }
  func.func @transform_4(%arg0: i32, %arg1: i32, %arg2: i32) -> (i32, i32, i32) {
    %c0_i32 = arith.constant 0 : i32
    %c0_i32_0 = arith.constant 0 : i32
    return %arg1, %arg0, %c0_i32 : i32, i32, i32
  }
}

</mosaic_0001>

<bundles_post_ra>
// kernel: _lambda_.5
= control target key start
LH: loop header
LB: loop body
LE: loop exit
PB: predicated region body
PF: predicated region fallthrough
CT: control target
= control target key end

     0   :  { %v347_v0 = vmov 0.0   ;;  %vm348_vm0 = vmmov 0   ;;  %s431_s1 = inlined_call_operand.vmem [shape: bf16[128,128], index: 1, kind: input, shape index: {}]   ;;  %s432_s3 = inlined_call_operand.vmem [shape: bf16[128,128], index: 3, kind: input, shape index: {}]   ;;  %s433_s0 = inlined_call_operand.vmem [shape: bf16[8,128], index: 0, kind: input, shape index: {}]   ;;  %s434_s2 = inlined_call_operand.vmem [shape: f32[1,128], index: 2, kind: input, shape index: {}]   ;;  %s435_s4 = inlined_call_operand.vmem [shape: f32[1,8,128], index: 4, kind: output, shape index: {}]  }
   0x1   :  { %289 = vmatprep.subr.bf16.mxu0 %v347_v0  ;;  %v331_v1 = vld [vmem:[%s431_s1] sm:$0xff]   ;;  %305 = vmatprep.mubr.msk.bf16.mxu0 %vm348_vm0, %v347_v0  ;;  %v332_v2 = vld [vmem:[%s431_s1 + $0x8] sm:$0xff]   ;;  %v333_v3 = vld [vmem:[%s431_s1 + $0x10] sm:$0xff]  }
   0x2   :  { %309 = vmatprep.subr.bf16.mxu1 %v347_v0  ;;  %325 = vmatprep.mubr.msk.bf16.mxu1 %vm348_vm0, %v347_v0  ;;  %v339_v4 = vld [vmem:[%s432_s3] sm:$0xff]   ;;  %v334_v5 = vld [vmem:[%s431_s1 + $0x18] sm:$0xff]   ;;  %v340_v6 = vld [vmem:[%s432_s3 + $0x8] sm:$0xff]  }
   0x3   :  { %290 = vmatpush3.bf16.msra.mxu0 %v331_v1  ;;  %310 = vmatpush3.bf16.msra.mxu1 %v339_v4  ;;  %v335_v7 = vld [vmem:[%s431_s1 + $0x20] sm:$0xff]   ;;  %v341_v8 = vld [vmem:[%s432_s3 + $0x10] sm:$0xff]   ;;  %v336_v9 = vld [vmem:[%s431_s1 + $0x28] sm:$0xff]  }
   0x4   :  { %291 = vmatprep.subr.bf16.mxu0 %v347_v0  ;;  %311 = vmatprep.subr.bf16.mxu1 %v347_v0  ;;  %v342_v10 = vld [vmem:[%s432_s3 + $0x18] sm:$0xff]   ;;  %v337_v11 = vld [vmem:[%s431_s1 + $0x30] sm:$0xff]   ;;  %v343_v12 = vld [vmem:[%s432_s3 + $0x20] sm:$0xff]  }
   0x5   :  { %v338_v13 = vld [vmem:[%s431_s1 + $0x38] sm:$0xff]   ;;  %v344_v14 = vld [vmem:[%s432_s3 + $0x28] sm:$0xff]   ;;  %v24_v15 = vld [vmem:[%s433_s0] sm:$0xf] }
   0x6   :  { %v345_v16 = vld [vmem:[%s432_s3 + $0x30] sm:$0xff]   ;;  %v346_v17 = vld [vmem:[%s432_s3 + $0x38] sm:$0xff]   ;;  %v262_v18 = vld [vmem:[%s434_s2] ss:$0 sm:$0xff] }
   0x7   :  { %292 = vmatpush3.bf16.msra.mxu0 %v332_v2  ;;  %312 = vmatpush3.bf16.msra.mxu1 %v340_v6 }
   0x8   :  { %293 = vmatprep.subr.bf16.mxu0 %v347_v0  ;;  %313 = vmatprep.subr.bf16.mxu1 %v347_v0 }
   0xb   :  { %294 = vmatpush3.bf16.msra.mxu0 %v333_v3  ;;  %314 = vmatpush3.bf16.msra.mxu1 %v341_v8 }
   0xc   :  { %295 = vmatprep.subr.bf16.mxu0 %v347_v0  ;;  %315 = vmatprep.subr.bf16.mxu1 %v347_v0 }
   0xf   :  { %296 = vmatpush3.bf16.msra.mxu0 %v334_v5  ;;  %316 = vmatpush3.bf16.msra.mxu1 %v342_v10 }
  0x10   :  { %297 = vmatprep.subr.bf16.mxu0 %v347_v0  ;;  %317 = vmatprep.subr.bf16.mxu1 %v347_v0 }
  0x13   :  { %298 = vmatpush3.bf16.msra.mxu0 %v335_v7  ;;  %318 = vmatpush3.bf16.msra.mxu1 %v343_v12 }
  0x14   :  { %299 = vmatprep.subr.bf16.mxu0 %v347_v0  ;;  %319 = vmatprep.subr.bf16.mxu1 %v347_v0 }
  0x17   :  { %300 = vmatpush3.bf16.msra.mxu0 %v336_v9  ;;  %320 = vmatpush3.bf16.msra.mxu1 %v344_v14 }
  0x18   :  { %301 = vmatprep.subr.bf16.mxu0 %v347_v0  ;;  %321 = vmatprep.subr.bf16.mxu1 %v347_v0 }
  0x1b   :  { %302 = vmatpush3.bf16.msra.mxu0 %v337_v11  ;;  %322 = vmatpush3.bf16.msra.mxu1 %v345_v16 }
  0x1c   :  { %303 = vmatprep.subr.bf16.mxu0 %v347_v0  ;;  %323 = vmatprep.subr.bf16.mxu1 %v347_v0 }
  0x1f   :  { %304 = vmatpush3.bf16.msra.mxu0 %v338_v13  ;;  %324 = vmatpush3.bf16.msra.mxu1 %v346_v17 }
  0x22   :  { %306 = vmatmul.mubr.bf16.vlgmr.msra.gmra.mrb[0].mxu0 %v24_v15 }
  0xf5   :  { %v123_v19 = vpop.f32.mrb[0].mxu0 }
  0xf6   :  { %v142_v20 = vadd.f32 %v262_v18, %v123_v19  ;;  %v307_v21 = vpop.f32.mrb[1].mxu0 }
  0xf7   :  { %v126_v22 = vpop.f32.mrb[2].mxu0 }
  0xf8   :  { %v143_v23 = vmax.f32 %v142_v20, 0.0  ;;  %v308_v24 = vpop.f32.mrb[3].mxu0 }
  0xfa   :  { %v144_v25 = vpack.c.bf16 %v143_v23, %v143_v23 }
  0xfc   :  { %326 = vmatmul.mubr.bf16.vlgmr.msra.gmra.mrb[0].mxu1 %v144_v25 }
 0x1cf   :  { %v243_v26 = vpop.f32.mrb[0].mxu1 }
 0x1d0   :  { %249 = vst [vmem:[%s435_s4] sm:$0xff] %v243_v26  ;;  %v327_v27 = vpop.f32.mrb[1].mxu1 }
 0x1d1   :  { %v246_v28 = vpop.f32.mrb[2].mxu1 }
 0x1d2   :  { %v328_v29 = vpop.f32.mrb[3].mxu1 }

// kernel: _lambda_.4
= control target key start
LH: loop header
LB: loop body
LE: loop exit
PB: predicated region body
PF: predicated region fallthrough
CT: control target
= control target key end

     0   :  { %s1334_s12 = smov 0   ;;  %s1336_s13 = smov 0   ;;  %s1443_s0 = inlined_call_operand.vmem [shape: bf16[8,6272], index: 0, kind: input, shape index: {}]   ;;  %s1444_s1 = inlined_call_operand.vmem [shape: bf16[6272,128], index: 1, kind: input, shape index: {}]   ;;  %s1445_s2 = inlined_call_operand.vmem [shape: f32[1,128], index: 2, kind: input, shape index: {}]   ;;  %s1446_s3 = inlined_call_operand.vmem [shape: bf16[8,128], index: 3, kind: output, shape index: {}]  }
   0x1   :  { %s1338_s14 = smov 0  }
   0x2 LB: > { %s25_s15 = sadd.s32 1, %s1305_s13  ;;  %p1030_p0 = scmp.ge.s32.totalorder %s1309_s14, 1  ;;  %s1309_s14 = sphi %s1338_s14, %s13_s14   ;;  %s1305_s13 = sphi %s1336_s13, %s1448_s13   ;;  %s1301_s12 = sphi %s1334_s12, %s1447_s12  }
   0x3   : > { %p26_p1 = scmp.ge.s32.totalorder %s25_s15, 7  ;;  %p189_p2 = scmp.lt.s32.totalorder %s1309_s14, 8 }
   0x5   : > { %s1450_s15 = smov (%p26_p1, %s25_s15), 0  ;;  %p190_p3 = pnand %p1030_p0, %p189_p2 }
   0x6   : > { %s230_s16 = smul.u32 (!%p190_p3), 7, %s1301_s12  ;;  %p1033_p6 = scmp.ne.s32.totalorder (!%p190_p3), %s1301_s12, 0 }
   0x7   : > { %193 = sbr.rel (%p190_p3) target bundleno = 326 (0x146), region = 32 }
   0x8   : > { %s240_s17 = smul.u32 (!%p190_p3), 112, %s1301_s12  ;;  %p233_p4 = scmp.lt.s32.totalorder (!%p190_p3), %s230_s16, 48 }
   0xa   : > { %p241_p5 = scmp.lt.s32.totalorder (!%p190_p3), %s240_s17, 783 }
   0xe   : > { %s1452_s16 = smov (!%p233_p4, %s230_s16), 48  ;;  %s1454_s17 = smov (!%p241_p5, %s240_s17), 783 }
   0xf   : > { %s1031_s18 = sshll.u32 %s1452_s16, 2  ;;  %s1032_s22 = sshll.u32 %s1454_s17, 2  ;;  %v1311_v0 = vmov (!%p1033_p6), 0.0  }
  0x10   : > { %s1359_s21 = scalar_lea.vmem %s1443_s0, %s1031_s18  ;;  %s1364_s25 = scalar_lea.vmem %s1444_s1, %s1032_s22  ;;  %264 = vst [vmem:[#allocation2] sm:$0xff] (!%p1033_p6), %v1311_v0 }
  0x11   : > { %263 = sbr.rel (%p1033_p6) target bundleno = 24 (0x18), region = 36 }
  0x18 PF: > { %v1224_v1 = vld [vmem:[%s1364_s25 + $0x40] sm:$0xff]   ;;  %v1228_v5 = vld [vmem:[%s1364_s25 + $0x48] sm:$0xff]   ;;  %v1232_v9 = vld [vmem:[%s1364_s25 + $0x50] sm:$0xff]   ;;  %v1312_v41 = vmov 0.0   ;;  %vm1313_vm0 = vmmov 0   ;;  %p1097_p7 = scmp.ne.s32.totalorder %s1301_s12, 6 }
  0x19   : > { %v1225_v2 = vld [vmem:[%s1364_s25 + $0xc0] sm:$0xff]   ;;  %1102 = vmatprep.subr.bf16.mxu0 %v1224_v1  ;;  %v1229_v6 = vld [vmem:[%s1364_s25 + $0xc8] sm:$0xff]   ;;  %v1233_v10 = vld [vmem:[%s1364_s25 + $0xd0] sm:$0xff]  }
  0x1a   : > { %v1226_v3 = vld [vmem:[%s1364_s25] sm:$0xff]   ;;  %1124 = vmatprep.subr.bf16.mxu1 %v1225_v2  ;;  %v1230_v7 = vld [vmem:[%s1364_s25 + $0x8] sm:$0xff]   ;;  %v1234_v11 = vld [vmem:[%s1364_s25 + $0x10] sm:$0xff]  }
  0x1b   : > { %v1227_v4 = vld [vmem:[%s1364_s25 + $0x80] sm:$0xff]   ;;  %1103 = vmatpush3.bf16.msra.mxu0 %v1226_v3  ;;  %v1231_v8 = vld [vmem:[%s1364_s25 + $0x88] sm:$0xff]   ;;  %v1235_v12 = vld [vmem:[%s1364_s25 + $0x90] sm:$0xff]  }
  0x1c   : > { %1125 = vmatpush3.bf16.msra.mxu1 %v1227_v4  ;;  %1104 = vmatprep.subr.bf16.mxu0 %v1228_v5  ;;  %v1236_v13 = vld [vmem:[%s1364_s25 + $0x58] sm:$0xff]   ;;  %v1240_v17 = vld [vmem:[%s1364_s25 + $0x60] sm:$0xff]   ;;  %v1244_v21 = vld [vmem:[%s1364_s25 + $0x68] sm:$0xff]  }
  0x1d   : > { %1126 = vmatprep.subr.bf16.mxu1 %v1229_v6  ;;  %v1237_v14 = vld [vmem:[%s1364_s25 + $0xd8] sm:$0xff]   ;;  %v1241_v18 = vld [vmem:[%s1364_s25 + $0xe0] sm:$0xff]   ;;  %v1245_v22 = vld [vmem:[%s1364_s25 + $0xe8] sm:$0xff]  }
  0x1e   : > { %v1238_v15 = vld [vmem:[%s1364_s25 + $0x18] sm:$0xff]   ;;  %v1242_v19 = vld [vmem:[%s1364_s25 + $0x20] sm:$0xff]   ;;  %v1246_v23 = vld [vmem:[%s1364_s25 + $0x28] sm:$0xff]  }
  0x1f   : > { %1105 = vmatpush3.bf16.msra.mxu0 %v1230_v7  ;;  %v1239_v16 = vld [vmem:[%s1364_s25 + $0x98] sm:$0xff]   ;;  %v1243_v20 = vld [vmem:[%s1364_s25 + $0xa0] sm:$0xff]   ;;  %v1247_v24 = vld [vmem:[%s1364_s25 + $0xa8] sm:$0xff]  }
  0x20   : > { %1127 = vmatpush3.bf16.msra.mxu1 %v1231_v8  ;;  %1106 = vmatprep.subr.bf16.mxu0 %v1232_v9  ;;  %v1248_v25 = vld [vmem:[%s1364_s25 + $0x70] sm:$0xff]   ;;  %v1252_v29 = vld [vmem:[%s1364_s25 + $0x78] sm:$0xff]   ;;  %v266_v33 = vld [vmem:[%s1359_s21] sm:$0xff] }
  0x21   : > { %1128 = vmatprep.subr.bf16.mxu1 %v1233_v10  ;;  %v1249_v26 = vld [vmem:[%s1364_s25 + $0xf0] sm:$0xff]   ;;  %v1253_v30 = vld [vmem:[%s1364_s25 + $0xf8] sm:$0xff]   ;;  %v267_v34 = vld [vmem:[%s1359_s21 + $0x8] sm:$0xff]  ;;  %v1034_v35 = vcombine.low %v266_v33, %v266_v33  ;;  %v1035_v36 = vcombine.high %v266_v33, %v266_v33 }
  0x22   : > { %v1250_v27 = vld [vmem:[%s1364_s25 + $0x30] sm:$0xff]   ;;  %v1254_v31 = vld [vmem:[%s1364_s25 + $0x38] sm:$0xff]   ;;  %v1036_v37 = vcombine.low %v267_v34, %v267_v34  ;;  %v1037_v38 = vcombine.high %v267_v34, %v267_v34  ;;  %v1260_v39 = vld [vmem:[%s1364_s25 + $0x140] sm:$0xff]  }
  0x23   : > { %1107 = vmatpush3.bf16.msra.mxu0 %v1234_v11  ;;  %v1251_v28 = vld [vmem:[%s1364_s25 + $0xb0] sm:$0xff]   ;;  %v1255_v32 = vld [vmem:[%s1364_s25 + $0xb8] sm:$0xff]   ;;  %v1261_v40 = vld [vmem:[%s1364_s25 + $0x100] sm:$0xff]   ;;  %775 = vmatprep.mubr.bf16.mxu0 %v1035_v36 }
  0x24   : > { %1129 = vmatpush3.bf16.msra.mxu1 %v1235_v12  ;;  %1108 = vmatprep.subr.bf16.mxu0 %v1236_v13  ;;  %v1262_v42 = vld [vmem:[%s1364_s25 + $0x180] sm:$0xff]   ;;  %v1263_v43 = vld [vmem:[%s1364_s25 + $0x148] sm:$0xff]   ;;  %v1266_v46 = vld [vmem:[%s1364_s25 + $0x150] sm:$0xff]  }
  0x25   : > { %1130 = vmatprep.subr.bf16.mxu1 %v1237_v14  ;;  %815 = vmatprep.mubr.bf16.mxu1 %v1037_v38  ;;  %v1264_v44 = vld [vmem:[%s1364_s25 + $0x108] sm:$0xff]   ;;  %v1268_v47 = vld [vmem:[%s1364_s25 + $0x190] sm:$0xff]   ;;  %v1269_v49 = vld [vmem:[%s1364_s25 + $0x158] sm:$0xff]  }
  0x26   : > { %v1265_v45 = vld [vmem:[%s1364_s25 + $0x188] sm:$0xff]   ;;  %v1267_v48 = vld [vmem:[%s1364_s25 + $0x110] sm:$0xff]   ;;  %v1271_v50 = vld [vmem:[%s1364_s25 + $0x198] sm:$0xff]  }
  0x27   : > { %1109 = vmatpush3.bf16.msra.mxu0 %v1238_v15  ;;  %v1270_v51 = vld [vmem:[%s1364_s25 + $0x118] sm:$0xff]   ;;  %v1272_v52 = vld [vmem:[%s1364_s25 + $0x160] sm:$0xff]   ;;  %v1275_v55 = vld [vmem:[%s1364_s25 + $0x168] sm:$0xff]  }
  0x28   : > { %1131 = vmatpush3.bf16.msra.mxu1 %v1239_v16  ;;  %1110 = vmatprep.subr.bf16.mxu0 %v1240_v17  ;;  %v1274_v53 = vld [vmem:[%s1364_s25 + $0x1a0] sm:$0xff]   ;;  %v1277_v56 = vld [vmem:[%s1364_s25 + $0x1a8] sm:$0xff]   ;;  %v1278_v58 = vld [vmem:[%s1364_s25 + $0x170] sm:$0xff]  }
  0x29   : > { %1132 = vmatprep.subr.bf16.mxu1 %v1241_v18  ;;  %v1273_v54 = vld [vmem:[%s1364_s25 + $0x120] sm:$0xff]   ;;  %v1276_v57 = vld [vmem:[%s1364_s25 + $0x128] sm:$0xff]   ;;  %v268_v59 = vld [vmem:[%s1359_s21 + $0x10] sm:$0xff] }
  0x2a   : > { %v1039_v60 = vcombine.high %v268_v59, %v268_v59  ;;  %v1280_v61 = vld [vmem:[%s1364_s25 + $0x1b0] sm:$0xff]   ;;  %v1281_v63 = vld [vmem:[%s1364_s25 + $0x178] sm:$0xff]   ;;  %v1038_v3 = vcombine.low %v268_v59, %v268_v59 }
  0x2b   : > { %1111 = vmatpush3.bf16.msra.mxu0 %v1242_v19  ;;  %v1279_v62 = vld [vmem:[%s1364_s25 + $0x130] sm:$0xff]   ;;  %v1285_v0 = vld [vmem:[%s1364_s25 + $0x1b8] sm:$0xff]  }
  0x2c   : > { %1133 = vmatpush3.bf16.msra.mxu1 %v1243_v20  ;;  %1112 = vmatprep.subr.bf16.mxu0 %v1244_v21  ;;  %v1282_v1 = vld [vmem:[%s1364_s25 + $0x138] sm:$0xff]  }
  0x2d   : > { %1134 = vmatprep.subr.bf16.mxu1 %v1245_v22  ;;  %v1286_v2 = vld [vmem:[%s1359_s21 + $0x18] ss:$0 sps:$4 sm:$0xff]  }
  0x2f   : > { %1113 = vmatpush3.bf16.msra.mxu0 %v1246_v23 }
  0x30   : > { %1135 = vmatpush3.bf16.msra.mxu1 %v1247_v24  ;;  %1114 = vmatprep.subr.bf16.mxu0 %v1248_v25  ;;  %v265_v25 = vld [vmem:[#allocation2] sm:$0xff] }
  0x31   : > { %1136 = vmatprep.subr.bf16.mxu1 %v1249_v26 }
  0x33   : > { %1115 = vmatpush3.bf16.msra.mxu0 %v1250_v27 }
  0x34   : > { %1137 = vmatpush3.bf16.msra.mxu1 %v1251_v28  ;;  %1116 = vmatprep.subr.bf16.mxu0 %v1252_v29  ;;  %v1098_v29 = vld [vmem:[%s1445_s2] ss:$0 sm:$0xff] (!%p1097_p7) }
  0x35   : > { %1138 = vmatprep.subr.bf16.mxu1 %v1253_v30 }
  0x37   : > { %1117 = vmatpush3.bf16.msra.mxu0 %v1254_v31 }
  0x38   : > { %1139 = vmatpush3.bf16.msra.mxu1 %v1255_v32  ;;  %1146 = vmatprep.subr.bf16.mxu0 %v1260_v39 }
  0x39   : > { %1177 = vmatprep.subr.bf16.mxu1 %v1312_v41 }
  0x3a   : > { %776 = vmatmul.mubr.bf16.vlgmr.msra.gmra.mrb[0].mxu0 %v1034_v35 }
  0x3b   : > { %816 = vmatmul.mubr.bf16.vlgmr.msra.gmra.mrb[0].mxu1 %v1036_v37  ;;  %1147 = vmatpush3.bf16.msra.mxu0 %v1261_v40 }
  0x3c   : > { %1178 = vmatpush3.bf16.msra.mxu1 %v1262_v42  ;;  %1148 = vmatprep.subr.bf16.mxu0 %v1263_v43 }
  0x3d   : > { %1179 = vmatprep.subr.bf16.mxu1 %v1312_v41  ;;  %1193 = vmatprep.mubr.msk.bf16.mxu1 %vm1313_vm0, %v1312_v41 }
  0x3e   : > { %855 = vmatprep.mubr.bf16.mxu0 %v1039_v60 }
  0x3f   : > { %1149 = vmatpush3.bf16.msra.mxu0 %v1264_v44 }
  0x40   : > { %1180 = vmatpush3.bf16.msra.mxu1 %v1265_v45  ;;  %1150 = vmatprep.subr.bf16.mxu0 %v1266_v46 }
  0x41   : > { %1181 = vmatprep.subr.bf16.mxu1 %v1312_v41 }
  0x43   : > { %1151 = vmatpush3.bf16.msra.mxu0 %v1267_v48 }
  0x44   : > { %1182 = vmatpush3.bf16.msra.mxu1 %v1268_v47  ;;  %1152 = vmatprep.subr.bf16.mxu0 %v1269_v49 }
  0x45   : > { %1183 = vmatprep.subr.bf16.mxu1 %v1312_v41 }
  0x47   : > { %1153 = vmatpush3.bf16.msra.mxu0 %v1270_v51 }
  0x48   : > { %1184 = vmatpush3.bf16.msra.mxu1 %v1271_v50  ;;  %1154 = vmatprep.subr.bf16.mxu0 %v1272_v52 }
  0x49   : > { %1185 = vmatprep.subr.bf16.mxu1 %v1312_v41 }
  0x4b   : > { %1155 = vmatpush3.bf16.msra.mxu0 %v1273_v54 }
  0x4c   : > { %1186 = vmatpush3.bf16.msra.mxu1 %v1274_v53  ;;  %1156 = vmatprep.subr.bf16.mxu0 %v1275_v55 }
  0x4d   : > { %1187 = vmatprep.subr.bf16.mxu1 %v1312_v41 }
  0x4f   : > { %1157 = vmatpush3.bf16.msra.mxu0 %v1276_v57 }
  0x50   : > { %1188 = vmatpush3.bf16.msra.mxu1 %v1277_v56  ;;  %1158 = vmatprep.subr.bf16.mxu0 %v1278_v58 }
  0x51   : > { %1189 = vmatprep.subr.bf16.mxu1 %v1312_v41 }
  0x53   : > { %1159 = vmatpush3.bf16.msra.mxu0 %v1279_v62 }
  0x54   : > { %1190 = vmatpush3.bf16.msra.mxu1 %v1280_v61  ;;  %1160 = vmatprep.subr.bf16.mxu0 %v1281_v63 }
  0x55   : > { %1191 = vmatprep.subr.bf16.mxu1 %v1312_v41 }
  0x57   : > { %1161 = vmatpush3.bf16.msra.mxu0 %v1282_v1 }
  0x58   : > { %1192 = vmatpush3.bf16.msra.mxu1 %v1285_v0 }
  0x5a   : > { %856 = vmatmul.mubr.bf16.vlgmr.msra.gmra.mrb[4].mxu0 %v1038_v3 }
  0x5b   : > { %1194 = vmatmul.mubr.bf16.vlgmr.msra.gmra.mrb[4].mxu1 %v1286_v2 }
 0x10d   : > { %v1118_v4 = vpop.f32.mrb[0].mxu0 }
 0x10e   : > { %v1140_v5 = vpop.f32.mrb[0].mxu1  ;;  %v1119_v6 = vpop.f32.mrb[1].mxu0 }
 0x10f   : > { %v1141_v7 = vpop.f32.mrb[1].mxu1  ;;  %v1120_v8 = vadd.f32 %v1119_v6, %v1118_v4  ;;  %v1121_v10 = vpop.f32.mrb[2].mxu0 }
 0x110   : > { %v1142_v9 = vadd.f32 %v1141_v7, %v1140_v5  ;;  %v1143_v11 = vpop.f32.mrb[2].mxu1  ;;  %v1122_v12 = vpop.f32.mrb[3].mxu0 }
 0x111   : > { %v1144_v13 = vpop.f32.mrb[3].mxu1 }
 0x112   : > { %v818_v14 = vadd.f32 %v1142_v9, %v1120_v8 }
 0x12d   : > { %v1162_v16 = vpop.f32.mrb[4].mxu0 }
 0x12e   : > { %v897_v15 = vpop.f32.mrb[4].mxu1  ;;  %v1163_v18 = vpop.f32.mrb[5].mxu0 }
 0x12f   : > { %v1195_v17 = vpop.f32.mrb[5].mxu1  ;;  %v1164_v20 = vadd.f32 %v1163_v18, %v1162_v16  ;;  %v1165_v21 = vpop.f32.mrb[6].mxu0 }
 0x130   : > { %v900_v19 = vpop.f32.mrb[6].mxu1  ;;  %v1166_v23 = vpop.f32.mrb[7].mxu0 }
 0x131   : > { %v1196_v22 = vpop.f32.mrb[7].mxu1  ;;  %v858_v24 = vadd.f32 %v1164_v20, %v818_v14  ;;  %908 = sbr.rel (%p1097_p7) target bundleno = 326 (0x146), region = 40 }
 0x133   : > { %v898_v26 = vadd.f32 %v897_v15, %v858_v24 }
 0x135   : > { %v903_v27 = vadd.f32 %v898_v26, %v265_v25 }
 0x137   : > { %904 = vst [vmem:[#allocation2] sm:$0xff] %v903_v27 }
 0x13e   : > { %v909_v28 = vld [vmem:[#allocation2] sm:$0xff] }
 0x13f   : > { %v917_v30 = vadd.f32 %v1098_v29, %v909_v28 }
 0x141   : > { %v918_v31 = vmax.f32 %v917_v30, 0.0 }
 0x143   : > { %v919_v32 = vpack.c.bf16 %v918_v31, %v918_v31 }
 0x145   : > { %920 = vst [vmem:[%s1446_s3] sm:$0xf] %v919_v32 }
 0x146 PF: > { %s13_s14 = sadd.s32 1, %s1309_s14   ;;  %s1447_s12 = smov %s1305_s13 }
 0x147   : > { %p10_p8 = scmp.ge.s32.totalorder %s13_s14, 9   ;;  %s1448_s13 = smov %s1450_s15 }
 0x149   :  { %12 = sbr.rel (!%p10_p8) target bundleno = 2 (0x2), region = 76 }

// kernel: _lambda_.3
= control target key start
LH: loop header
LB: loop body
LE: loop exit
PB: predicated region body
PF: predicated region fallthrough
CT: control target
= control target key end

     0   :  { %v2036_v0 = vmov 0.0   ;;  %vm2037_vm0 = vmmov 0   ;;  %s2511_s3 = inlined_call_operand.vmem [shape: bf16[128,128], index: 3, kind: input, shape index: {}]   ;;  %s2512_s2 = inlined_call_operand.vmem [shape: bf16[128,128], index: 2, kind: input, shape index: {}]   ;;  %s2513_s1 = inlined_call_operand.vmem [shape: bf16[392,128], index: 1, kind: input, shape index: {}]   ;;  %s2514_s0 = inlined_call_operand.vmem [shape: bf16[392,128], index: 0, kind: input, shape index: {}]   ;;  %s2515_s4 = inlined_call_operand.vmem [shape: f32[1,128], index: 4, kind: input, shape index: {}]   ;;  %s2516_s5 = inlined_call_operand.vmem [shape: bf16[392,128], index: 5, kind: output, shape index: {}]  }
   0x1   :  { %1736 = vmatprep.subr.bf16.mxu0 %v2036_v0  ;;  %1852 = vmatprep.subr.bf16.mxu1 %v2036_v0  ;;  %v1970_v1 = vld [vmem:[%s2511_s3] sm:$0xff]   ;;  %v1972_v3 = vld [vmem:[%s2511_s3 + $0x8] sm:$0xff]   ;;  %v1974_v5 = vld [vmem:[%s2511_s3 + $0x10] sm:$0xff]  }
   0x2   :  { %v1971_v2 = vld [vmem:[%s2512_s2] sm:$0xff]   ;;  %1752 = vmatprep.mubr.msk.bf16.mxu0 %vm2037_vm0, %v2036_v0  ;;  %1868 = vmatprep.mubr.msk.bf16.mxu1 %vm2037_vm0, %v2036_v0  ;;  %v1973_v4 = vld [vmem:[%s2512_s2 + $0x8] sm:$0xff]   ;;  %v1975_v6 = vld [vmem:[%s2512_s2 + $0x10] sm:$0xff]  }
   0x3   :  { %1737 = vmatpush3.bf16.msra.mxu0 %v1970_v1  ;;  %1853 = vmatpush3.bf16.msra.mxu1 %v1971_v2  ;;  %v1976_v7 = vld [vmem:[%s2511_s3 + $0x18] sm:$0xff]   ;;  %v1978_v9 = vld [vmem:[%s2511_s3 + $0x20] sm:$0xff]   ;;  %v1980_v11 = vld [vmem:[%s2511_s3 + $0x28] sm:$0xff]  }
   0x4   :  { %1738 = vmatprep.subr.bf16.mxu0 %v2036_v0  ;;  %1854 = vmatprep.subr.bf16.mxu1 %v2036_v0  ;;  %v1977_v8 = vld [vmem:[%s2512_s2 + $0x18] sm:$0xff]   ;;  %v1979_v10 = vld [vmem:[%s2512_s2 + $0x20] sm:$0xff]   ;;  %v1981_v12 = vld [vmem:[%s2512_s2 + $0x28] sm:$0xff]  }
   0x5   :  { %v1982_v13 = vld [vmem:[%s2511_s3 + $0x30] sm:$0xff]   ;;  %v1984_v15 = vld [vmem:[%s2511_s3 + $0x38] sm:$0xff]   ;;  %v1986_v17 = vld [vmem:[%s2513_s1] sm:$0xff]  }
   0x6   :  { %v1983_v14 = vld [vmem:[%s2512_s2 + $0x30] sm:$0xff]   ;;  %v1985_v16 = vld [vmem:[%s2512_s2 + $0x38] sm:$0xff]   ;;  %v1987_v18 = vld [vmem:[%s2514_s0] sm:$0xff]  }
   0x7   :  { %1739 = vmatpush3.bf16.msra.mxu0 %v1972_v3  ;;  %1855 = vmatpush3.bf16.msra.mxu1 %v1973_v4  ;;  %v1988_v19 = vld [vmem:[%s2513_s1 + $0x8] sm:$0xff]   ;;  %v1990_v21 = vld [vmem:[%s2513_s1 + $0x10] sm:$0xff]   ;;  %v1992_v23 = vld [vmem:[%s2513_s1 + $0x18] sm:$0xff]  }
   0x8   :  { %1740 = vmatprep.subr.bf16.mxu0 %v2036_v0  ;;  %1856 = vmatprep.subr.bf16.mxu1 %v2036_v0  ;;  %v1989_v20 = vld [vmem:[%s2514_s0 + $0x8] sm:$0xff]   ;;  %v1991_v22 = vld [vmem:[%s2514_s0 + $0x10] sm:$0xff]   ;;  %v1993_v24 = vld [vmem:[%s2514_s0 + $0x18] sm:$0xff]  }
   0x9   :  { %v1994_v25 = vld [vmem:[%s2513_s1 + $0x20] sm:$0xff]   ;;  %v1996_v27 = vld [vmem:[%s2513_s1 + $0x28] sm:$0xff]   ;;  %v1998_v29 = vld [vmem:[%s2513_s1 + $0x30] sm:$0xff]  }
   0xa   :  { %v1995_v26 = vld [vmem:[%s2514_s0 + $0x20] sm:$0xff]   ;;  %v1997_v28 = vld [vmem:[%s2514_s0 + $0x28] sm:$0xff]   ;;  %v1999_v30 = vld [vmem:[%s2514_s0 + $0x30] sm:$0xff]  }
   0xb   :  { %1741 = vmatpush3.bf16.msra.mxu0 %v1974_v5  ;;  %1857 = vmatpush3.bf16.msra.mxu1 %v1975_v6  ;;  %v2000_v31 = vld [vmem:[%s2513_s1 + $0x38] sm:$0xff]   ;;  %v2002_v33 = vld [vmem:[%s2513_s1 + $0x40] sm:$0xff]   ;;  %v2004_v35 = vld [vmem:[%s2513_s1 + $0x48] sm:$0xff]  }
   0xc   :  { %1742 = vmatprep.subr.bf16.mxu0 %v2036_v0  ;;  %1858 = vmatprep.subr.bf16.mxu1 %v2036_v0  ;;  %v2001_v32 = vld [vmem:[%s2514_s0 + $0x38] sm:$0xff]   ;;  %v2003_v34 = vld [vmem:[%s2514_s0 + $0x40] sm:$0xff]   ;;  %v2005_v36 = vld [vmem:[%s2514_s0 + $0x48] sm:$0xff]  }
   0xd   :  { %v2006_v37 = vld [vmem:[%s2513_s1 + $0x50] sm:$0xff]   ;;  %v2008_v39 = vld [vmem:[%s2513_s1 + $0x58] sm:$0xff]   ;;  %v2010_v41 = vld [vmem:[%s2513_s1 + $0x60] sm:$0xff]  }
   0xe   :  { %v2007_v38 = vld [vmem:[%s2514_s0 + $0x50] sm:$0xff]   ;;  %v2009_v40 = vld [vmem:[%s2514_s0 + $0x58] sm:$0xff]   ;;  %v2011_v42 = vld [vmem:[%s2514_s0 + $0x60] sm:$0xff]  }
   0xf   :  { %1743 = vmatpush3.bf16.msra.mxu0 %v1976_v7  ;;  %1859 = vmatpush3.bf16.msra.mxu1 %v1977_v8  ;;  %v2012_v43 = vld [vmem:[%s2513_s1 + $0x68] sm:$0xff]   ;;  %v2014_v45 = vld [vmem:[%s2513_s1 + $0x70] sm:$0xff]   ;;  %v2016_v47 = vld [vmem:[%s2513_s1 + $0x78] sm:$0xff]  }
  0x10   :  { %1744 = vmatprep.subr.bf16.mxu0 %v2036_v0  ;;  %1860 = vmatprep.subr.bf16.mxu1 %v2036_v0  ;;  %v2013_v44 = vld [vmem:[%s2514_s0 + $0x68] sm:$0xff]   ;;  %v2015_v46 = vld [vmem:[%s2514_s0 + $0x70] sm:$0xff]   ;;  %v2017_v48 = vld [vmem:[%s2514_s0 + $0x78] sm:$0xff]  }
  0x11   :  { %v2018_v49 = vld [vmem:[%s2513_s1 + $0x80] sm:$0xff]   ;;  %v2020_v51 = vld [vmem:[%s2513_s1 + $0x88] sm:$0xff]   ;;  %v2022_v53 = vld [vmem:[%s2513_s1 + $0x90] sm:$0xff]  }
  0x12   :  { %v2019_v50 = vld [vmem:[%s2514_s0 + $0x80] sm:$0xff]   ;;  %v2021_v52 = vld [vmem:[%s2514_s0 + $0x88] sm:$0xff]   ;;  %v2023_v54 = vld [vmem:[%s2514_s0 + $0x90] sm:$0xff]  }
  0x13   :  { %1745 = vmatpush3.bf16.msra.mxu0 %v1978_v9  ;;  %1861 = vmatpush3.bf16.msra.mxu1 %v1979_v10  ;;  %v2024_v55 = vld [vmem:[%s2513_s1 + $0x98] sm:$0xff]   ;;  %v2026_v57 = vld [vmem:[%s2513_s1 + $0xa0] sm:$0xff]   ;;  %v2028_v59 = vld [vmem:[%s2513_s1 + $0xa8] sm:$0xff]  }
  0x14   :  { %1746 = vmatprep.subr.bf16.mxu0 %v2036_v0  ;;  %1862 = vmatprep.subr.bf16.mxu1 %v2036_v0  ;;  %v2025_v56 = vld [vmem:[%s2514_s0 + $0x98] sm:$0xff]   ;;  %v2027_v58 = vld [vmem:[%s2514_s0 + $0xa0] sm:$0xff]   ;;  %v2029_v60 = vld [vmem:[%s2514_s0 + $0xa8] sm:$0xff]  }
  0x15   :  { %v2030_v61 = vld [vmem:[%s2513_s1 + $0xb0] sm:$0xff]   ;;  %v2032_v63 = vld [vmem:[%s2513_s1 + $0xb8] sm:$0xff]   ;;  %v2034_v2 = vld [vmem:[%s2513_s1 + $0xc0] ss:$0 sps:$4 sm:$0xff]  }
  0x16   :  { %v2031_v62 = vld [vmem:[%s2514_s0 + $0xb0] sm:$0xff]   ;;  %v2033_v1 = vld [vmem:[%s2514_s0 + $0xb8] sm:$0xff]   ;;  %v2035_v3 = vld [vmem:[%s2514_s0 + $0xc0] ss:$0 sps:$4 sm:$0xff]  }
  0x17   :  { %1747 = vmatpush3.bf16.msra.mxu0 %v1980_v11  ;;  %1863 = vmatpush3.bf16.msra.mxu1 %v1981_v12  ;;  %v2385_v6 = vld [vmem:[%s2515_s4] ss:$0 sm:$0xff] }
  0x18   :  { %1748 = vmatprep.subr.bf16.mxu0 %v2036_v0  ;;  %1864 = vmatprep.subr.bf16.mxu1 %v2036_v0 }
  0x1b   :  { %1749 = vmatpush3.bf16.msra.mxu0 %v1982_v13  ;;  %1865 = vmatpush3.bf16.msra.mxu1 %v1983_v14 }
  0x1c   :  { %1750 = vmatprep.subr.bf16.mxu0 %v2036_v0  ;;  %1866 = vmatprep.subr.bf16.mxu1 %v2036_v0 }
  0x1f   :  { %1751 = vmatpush3.bf16.msra.mxu0 %v1984_v15  ;;  %1867 = vmatpush3.bf16.msra.mxu1 %v1985_v16 }
  0x22   :  { %1753 = vmatmul.mubr.bf16.vlgmr.msra.gmra.mrb[0].mxu0 %v1986_v17  ;;  %1869 = vmatmul.mubr.bf16.vlgmr.msra.gmra.mrb[0].mxu1 %v1987_v18 }
  0x23   :  { %1756 = vmatprep.mubr.msk.bf16.mxu0 %vm2037_vm0, %v2036_v0  ;;  %1872 = vmatprep.mubr.msk.bf16.mxu1 %vm2037_vm0, %v2036_v0 }
  0x2a   :  { %1757 = vmatmul.mubr.bf16.gmra.mrb[4].mxu0 %v1988_v19  ;;  %1873 = vmatmul.mubr.bf16.gmra.mrb[4].mxu1 %v1989_v20 }
  0x2b   :  { %1760 = vmatprep.mubr.msk.bf16.mxu0 %vm2037_vm0, %v2036_v0  ;;  %1876 = vmatprep.mubr.msk.bf16.mxu1 %vm2037_vm0, %v2036_v0 }
  0x32   :  { %1761 = vmatmul.mubr.bf16.gmra.mrb[8].mxu0 %v1990_v21  ;;  %1877 = vmatmul.mubr.bf16.gmra.mrb[8].mxu1 %v1991_v22 }
  0x33   :  { %1764 = vmatprep.mubr.msk.bf16.mxu0 %vm2037_vm0, %v2036_v0  ;;  %1880 = vmatprep.mubr.msk.bf16.mxu1 %vm2037_vm0, %v2036_v0 }
  0x3a   :  { %1765 = vmatmul.mubr.bf16.gmra.mrb[12].mxu0 %v1992_v23  ;;  %1881 = vmatmul.mubr.bf16.gmra.mrb[12].mxu1 %v1993_v24 }
  0x3b   :  { %1768 = vmatprep.mubr.msk.bf16.mxu0 %vm2037_vm0, %v2036_v0  ;;  %1884 = vmatprep.mubr.msk.bf16.mxu1 %vm2037_vm0, %v2036_v0 }
  0x42   :  { %1769 = vmatmul.mubr.bf16.gmra.mrb[16].mxu0 %v1994_v25  ;;  %1885 = vmatmul.mubr.bf16.gmra.mrb[16].mxu1 %v1995_v26 }
  0x43   :  { %1772 = vmatprep.mubr.msk.bf16.mxu0 %vm2037_vm0, %v2036_v0  ;;  %1888 = vmatprep.mubr.msk.bf16.mxu1 %vm2037_vm0, %v2036_v0 }
  0x4a   :  { %1773 = vmatmul.mubr.bf16.gmra.mrb[20].mxu0 %v1996_v27  ;;  %1889 = vmatmul.mubr.bf16.gmra.mrb[20].mxu1 %v1997_v28 }
  0x4b   :  { %1776 = vmatprep.mubr.msk.bf16.mxu0 %vm2037_vm0, %v2036_v0  ;;  %1892 = vmatprep.mubr.msk.bf16.mxu1 %vm2037_vm0, %v2036_v0 }
  0x52   :  { %1777 = vmatmul.mubr.bf16.gmra.mrb[24].mxu0 %v1998_v29  ;;  %1893 = vmatmul.mubr.bf16.gmra.mrb[24].mxu1 %v1999_v30 }
  0x53   :  { %1780 = vmatprep.mubr.msk.bf16.mxu0 %vm2037_vm0, %v2036_v0  ;;  %1896 = vmatprep.mubr.msk.bf16.mxu1 %vm2037_vm0, %v2036_v0 }
  0x5a   :  { %1781 = vmatmul.mubr.bf16.gmra.mrb[28].mxu0 %v2000_v31  ;;  %1897 = vmatmul.mubr.bf16.gmra.mrb[28].mxu1 %v2001_v32 }
  0x5b   :  { %1784 = vmatprep.mubr.msk.bf16.mxu0 %vm2037_vm0, %v2036_v0  ;;  %1900 = vmatprep.mubr.msk.bf16.mxu1 %vm2037_vm0, %v2036_v0 }
  0x62   :  { %1785 = vmatmul.mubr.bf16.gmra.mrb[32].mxu0 %v2002_v33  ;;  %1901 = vmatmul.mubr.bf16.gmra.mrb[32].mxu1 %v2003_v34 }
  0x63   :  { %1788 = vmatprep.mubr.msk.bf16.mxu0 %vm2037_vm0, %v2036_v0  ;;  %1904 = vmatprep.mubr.msk.bf16.mxu1 %vm2037_vm0, %v2036_v0 }
  0x6a   :  { %1789 = vmatmul.mubr.bf16.gmra.mrb[36].mxu0 %v2004_v35  ;;  %1905 = vmatmul.mubr.bf16.gmra.mrb[36].mxu1 %v2005_v36 }
  0x6b   :  { %1792 = vmatprep.mubr.msk.bf16.mxu0 %vm2037_vm0, %v2036_v0  ;;  %1908 = vmatprep.mubr.msk.bf16.mxu1 %vm2037_vm0, %v2036_v0 }
  0x72   :  { %1793 = vmatmul.mubr.bf16.gmra.mrb[40].mxu0 %v2006_v37  ;;  %1909 = vmatmul.mubr.bf16.gmra.mrb[40].mxu1 %v2007_v38 }
  0x73   :  { %1796 = vmatprep.mubr.msk.bf16.mxu0 %vm2037_vm0, %v2036_v0  ;;  %1912 = vmatprep.mubr.msk.bf16.mxu1 %vm2037_vm0, %v2036_v0 }
  0x7a   :  { %1797 = vmatmul.mubr.bf16.gmra.mrb[44].mxu0 %v2008_v39  ;;  %1913 = vmatmul.mubr.bf16.gmra.mrb[44].mxu1 %v2009_v40 }
  0x7b   :  { %1800 = vmatprep.mubr.msk.bf16.mxu0 %vm2037_vm0, %v2036_v0  ;;  %1916 = vmatprep.mubr.msk.bf16.mxu1 %vm2037_vm0, %v2036_v0 }
  0x82   :  { %1801 = vmatmul.mubr.bf16.gmra.mrb[48].mxu0 %v2010_v41  ;;  %1917 = vmatmul.mubr.bf16.gmra.mrb[48].mxu1 %v2011_v42 }
  0x83   :  { %1804 = vmatprep.mubr.msk.bf16.mxu0 %vm2037_vm0, %v2036_v0  ;;  %1920 = vmatprep.mubr.msk.bf16.mxu1 %vm2037_vm0, %v2036_v0 }
  0x8a   :  { %1805 = vmatmul.mubr.bf16.gmra.mrb[52].mxu0 %v2012_v43  ;;  %1921 = vmatmul.mubr.bf16.gmra.mrb[52].mxu1 %v2013_v44 }
  0x8b   :  { %1808 = vmatprep.mubr.msk.bf16.mxu0 %vm2037_vm0, %v2036_v0  ;;  %1924 = vmatprep.mubr.msk.bf16.mxu1 %vm2037_vm0, %v2036_v0 }
  0x92   :  { %1809 = vmatmul.mubr.bf16.gmra.mrb[56].mxu0 %v2014_v45  ;;  %1925 = vmatmul.mubr.bf16.gmra.mrb[56].mxu1 %v2015_v46 }
  0x93   :  { %1812 = vmatprep.mubr.msk.bf16.mxu0 %vm2037_vm0, %v2036_v0  ;;  %1928 = vmatprep.mubr.msk.bf16.mxu1 %vm2037_vm0, %v2036_v0 }
  0x9a   :  { %1813 = vmatmul.mubr.bf16.gmra.mrb[60].mxu0 %v2016_v47  ;;  %1929 = vmatmul.mubr.bf16.gmra.mrb[60].mxu1 %v2017_v48 }
  0x9b   :  { %1816 = vmatprep.mubr.msk.bf16.mxu0 %vm2037_vm0, %v2036_v0  ;;  %1932 = vmatprep.mubr.msk.bf16.mxu1 %vm2037_vm0, %v2036_v0 }
  0xa2   :  { %1817 = vmatmul.mubr.bf16.gmra.mrb[64].mxu0 %v2018_v49  ;;  %1933 = vmatmul.mubr.bf16.gmra.mrb[64].mxu1 %v2019_v50 }
  0xa3   :  { %1820 = vmatprep.mubr.msk.bf16.mxu0 %vm2037_vm0, %v2036_v0  ;;  %1936 = vmatprep.mubr.msk.bf16.mxu1 %vm2037_vm0, %v2036_v0 }
  0xaa   :  { %1821 = vmatmul.mubr.bf16.gmra.mrb[68].mxu0 %v2020_v51  ;;  %1937 = vmatmul.mubr.bf16.gmra.mrb[68].mxu1 %v2021_v52 }
  0xab   :  { %1824 = vmatprep.mubr.msk.bf16.mxu0 %vm2037_vm0, %v2036_v0  ;;  %1940 = vmatprep.mubr.msk.bf16.mxu1 %vm2037_vm0, %v2036_v0 }
  0xb2   :  { %1825 = vmatmul.mubr.bf16.gmra.mrb[72].mxu0 %v2022_v53  ;;  %1941 = vmatmul.mubr.bf16.gmra.mrb[72].mxu1 %v2023_v54 }
  0xb3   :  { %1828 = vmatprep.mubr.msk.bf16.mxu0 %vm2037_vm0, %v2036_v0  ;;  %1944 = vmatprep.mubr.msk.bf16.mxu1 %vm2037_vm0, %v2036_v0 }
  0xba   :  { %1829 = vmatmul.mubr.bf16.gmra.mrb[76].mxu0 %v2024_v55  ;;  %1945 = vmatmul.mubr.bf16.gmra.mrb[76].mxu1 %v2025_v56 }
  0xbb   :  { %1832 = vmatprep.mubr.msk.bf16.mxu0 %vm2037_vm0, %v2036_v0  ;;  %1948 = vmatprep.mubr.msk.bf16.mxu1 %vm2037_vm0, %v2036_v0 }
  0xc2   :  { %1833 = vmatmul.mubr.bf16.gmra.mrb[80].mxu0 %v2026_v57  ;;  %1949 = vmatmul.mubr.bf16.gmra.mrb[80].mxu1 %v2027_v58 }
  0xc3   :  { %1836 = vmatprep.mubr.msk.bf16.mxu0 %vm2037_vm0, %v2036_v0  ;;  %1952 = vmatprep.mubr.msk.bf16.mxu1 %vm2037_vm0, %v2036_v0 }
  0xca   :  { %1837 = vmatmul.mubr.bf16.gmra.mrb[84].mxu0 %v2028_v59  ;;  %1953 = vmatmul.mubr.bf16.gmra.mrb[84].mxu1 %v2029_v60 }
  0xcb   :  { %1840 = vmatprep.mubr.msk.bf16.mxu0 %vm2037_vm0, %v2036_v0  ;;  %1956 = vmatprep.mubr.msk.bf16.mxu1 %vm2037_vm0, %v2036_v0 }
  0xd2   :  { %1841 = vmatmul.mubr.bf16.gmra.mrb[88].mxu0 %v2030_v61  ;;  %1957 = vmatmul.mubr.bf16.gmra.mrb[88].mxu1 %v2031_v62 }
  0xd3   :  { %1844 = vmatprep.mubr.msk.bf16.mxu0 %vm2037_vm0, %v2036_v0  ;;  %1960 = vmatprep.mubr.msk.bf16.mxu1 %vm2037_vm0, %v2036_v0 }
  0xda   :  { %1845 = vmatmul.mubr.bf16.gmra.mrb[92].mxu0 %v2032_v63  ;;  %1961 = vmatmul.mubr.bf16.gmra.mrb[92].mxu1 %v2033_v1 }
  0xdb   :  { %1848 = vmatprep.mubr.msk.bf16.mxu0 %vm2037_vm0, %v2036_v0  ;;  %1964 = vmatprep.mubr.msk.bf16.mxu1 %vm2037_vm0, %v2036_v0 }
  0xe2   :  { %1849 = vmatmul.mubr.bf16.gmra.mrb[96].mxu0 %v2034_v2  ;;  %1965 = vmatmul.mubr.bf16.gmra.mrb[96].mxu1 %v2035_v3 }
  0xf5   :  { %v381_v4 = vpop.f32.mrb[0].mxu0  ;;  %v809_v5 = vpop.f32.mrb[0].mxu1 }
  0xf6   :  { %v1754_v7 = vpop.f32.mrb[1].mxu0  ;;  %v810_v8 = vadd.f32 %v809_v5, %v381_v4  ;;  %v1870_v0 = vpop.f32.mrb[1].mxu1 }
  0xf7   :  { %v384_v9 = vpop.f32.mrb[2].mxu0  ;;  %v812_v10 = vpop.f32.mrb[2].mxu1 }
  0xf8   :  { %v1755_v11 = vpop.f32.mrb[3].mxu0  ;;  %v1014_v12 = vadd.f32 %v2385_v6, %v810_v8  ;;  %v813_v13 = vadd.f32 %v812_v10, %v384_v9  ;;  %v1871_v14 = vpop.f32.mrb[3].mxu1 }
  0xfa   :  { %v1015_v15 = vadd.f32 %v2385_v6, %v813_v13  ;;  %v1063_v16 = vmax.f32 %v1014_v12, 0.0 }
  0xfc   :  { %v1064_v17 = vmax.f32 %v1015_v15, 0.0 }
  0xfd   :  { %v389_v18 = vpop.f32.mrb[4].mxu0  ;;  %v817_v19 = vpop.f32.mrb[4].mxu1 }
  0xfe   :  { %v1758_v20 = vpop.f32.mrb[5].mxu0  ;;  %v1530_v21 = vpack.c.bf16 %v1064_v17, %v1063_v16  ;;  %v818_v22 = vadd.f32 %v817_v19, %v389_v18  ;;  %v1874_v23 = vpop.f32.mrb[5].mxu1 }
  0xff   :  { %v392_v24 = vpop.f32.mrb[6].mxu0  ;;  %v820_v25 = vpop.f32.mrb[6].mxu1 }
 0x100   :  { %v1759_v26 = vpop.f32.mrb[7].mxu0  ;;  %1531 = vst [vmem:[%s2516_s5] sm:$0xff] %v1530_v21   ;;  %v1016_v27 = vadd.f32 %v2385_v6, %v818_v22  ;;  %v821_v28 = vadd.f32 %v820_v25, %v392_v24  ;;  %v1875_v29 = vpop.f32.mrb[7].mxu1 }
 0x102   :  { %v1017_v30 = vadd.f32 %v2385_v6, %v821_v28  ;;  %v1065_v31 = vmax.f32 %v1016_v27, 0.0 }
 0x104   :  { %v1066_v32 = vmax.f32 %v1017_v30, 0.0 }
 0x105   :  { %v397_v33 = vpop.f32.mrb[8].mxu0  ;;  %v825_v34 = vpop.f32.mrb[8].mxu1 }
 0x106   :  { %v1762_v35 = vpop.f32.mrb[9].mxu0  ;;  %v1535_v36 = vpack.c.bf16 %v1066_v32, %v1065_v31  ;;  %v826_v37 = vadd.f32 %v825_v34, %v397_v33  ;;  %v1878_v38 = vpop.f32.mrb[9].mxu1 }
 0x107   :  { %v400_v39 = vpop.f32.mrb[10].mxu0  ;;  %v828_v40 = vpop.f32.mrb[10].mxu1 }
 0x108   :  { %v1763_v41 = vpop.f32.mrb[11].mxu0  ;;  %1647 = vst [vmem:[%s2516_s5 + $0x8] sm:$0xff] %v1535_v36   ;;  %v1018_v42 = vadd.f32 %v2385_v6, %v826_v37  ;;  %v829_v43 = vadd.f32 %v828_v40, %v400_v39  ;;  %v1879_v44 = vpop.f32.mrb[11].mxu1 }
 0x10a   :  { %v1019_v45 = vadd.f32 %v2385_v6, %v829_v43  ;;  %v1067_v46 = vmax.f32 %v1018_v42, 0.0 }
 0x10c   :  { %v1068_v47 = vmax.f32 %v1019_v45, 0.0 }
 0x10d   :  { %v405_v48 = vpop.f32.mrb[12].mxu0  ;;  %v833_v49 = vpop.f32.mrb[12].mxu1 }
 0x10e   :  { %v1766_v50 = vpop.f32.mrb[13].mxu0  ;;  %v1540_v51 = vpack.c.bf16 %v1068_v47, %v1067_v46  ;;  %v834_v52 = vadd.f32 %v833_v49, %v405_v48  ;;  %v1882_v53 = vpop.f32.mrb[13].mxu1 }
 0x10f   :  { %v408_v54 = vpop.f32.mrb[14].mxu0  ;;  %v836_v55 = vpop.f32.mrb[14].mxu1 }
 0x110   :  { %v1767_v56 = vpop.f32.mrb[15].mxu0  ;;  %1648 = vst [vmem:[%s2516_s5 + $0x10] sm:$0xff] %v1540_v51   ;;  %v1020_v57 = vadd.f32 %v2385_v6, %v834_v52  ;;  %v837_v58 = vadd.f32 %v836_v55, %v408_v54  ;;  %v1883_v59 = vpop.f32.mrb[15].mxu1 }
 0x112   :  { %v1021_v60 = vadd.f32 %v2385_v6, %v837_v58  ;;  %v1069_v61 = vmax.f32 %v1020_v57, 0.0 }
 0x114   :  { %v1070_v62 = vmax.f32 %v1021_v60, 0.0 }
 0x115   :  { %v413_v63 = vpop.f32.mrb[16].mxu0  ;;  %v841_v1 = vpop.f32.mrb[16].mxu1 }
 0x116   :  { %v1770_v2 = vpop.f32.mrb[17].mxu0  ;;  %v1545_v3 = vpack.c.bf16 %v1070_v62, %v1069_v61  ;;  %v842_v4 = vadd.f32 %v841_v1, %v413_v63  ;;  %v1886_v5 = vpop.f32.mrb[17].mxu1 }
 0x117   :  { %v416_v7 = vpop.f32.mrb[18].mxu0  ;;  %v844_v8 = vpop.f32.mrb[18].mxu1 }
 0x118   :  { %v1771_v0 = vpop.f32.mrb[19].mxu0  ;;  %1649 = vst [vmem:[%s2516_s5 + $0x18] sm:$0xff] %v1545_v3   ;;  %v1022_v9 = vadd.f32 %v2385_v6, %v842_v4  ;;  %v845_v10 = vadd.f32 %v844_v8, %v416_v7  ;;  %v1887_v11 = vpop.f32.mrb[19].mxu1 }
 0x11a   :  { %v1023_v12 = vadd.f32 %v2385_v6, %v845_v10  ;;  %v1071_v13 = vmax.f32 %v1022_v9, 0.0 }
 0x11c   :  { %v1072_v14 = vmax.f32 %v1023_v12, 0.0 }
 0x11d   :  { %v421_v15 = vpop.f32.mrb[20].mxu0  ;;  %v849_v16 = vpop.f32.mrb[20].mxu1 }
 0x11e   :  { %v1774_v17 = vpop.f32.mrb[21].mxu0  ;;  %v1550_v18 = vpack.c.bf16 %v1072_v14, %v1071_v13  ;;  %v850_v19 = vadd.f32 %v849_v16, %v421_v15  ;;  %v1890_v20 = vpop.f32.mrb[21].mxu1 }
 0x11f   :  { %v424_v21 = vpop.f32.mrb[22].mxu0  ;;  %v852_v22 = vpop.f32.mrb[22].mxu1 }
 0x120   :  { %v1775_v23 = vpop.f32.mrb[23].mxu0  ;;  %1650 = vst [vmem:[%s2516_s5 + $0x20] sm:$0xff] %v1550_v18   ;;  %v1024_v24 = vadd.f32 %v2385_v6, %v850_v19  ;;  %v853_v25 = vadd.f32 %v852_v22, %v424_v21  ;;  %v1891_v26 = vpop.f32.mrb[23].mxu1 }
 0x122   :  { %v1025_v27 = vadd.f32 %v2385_v6, %v853_v25  ;;  %v1073_v28 = vmax.f32 %v1024_v24, 0.0 }
 0x124   :  { %v1074_v29 = vmax.f32 %v1025_v27, 0.0 }
 0x125   :  { %v429_v30 = vpop.f32.mrb[24].mxu0  ;;  %v857_v31 = vpop.f32.mrb[24].mxu1 }
 0x126   :  { %v1778_v32 = vpop.f32.mrb[25].mxu0  ;;  %v1555_v33 = vpack.c.bf16 %v1074_v29, %v1073_v28  ;;  %v858_v34 = vadd.f32 %v857_v31, %v429_v30  ;;  %v1894_v35 = vpop.f32.mrb[25].mxu1 }
 0x127   :  { %v432_v36 = vpop.f32.mrb[26].mxu0  ;;  %v860_v37 = vpop.f32.mrb[26].mxu1 }
 0x128   :  { %v1779_v38 = vpop.f32.mrb[27].mxu0  ;;  %1651 = vst [vmem:[%s2516_s5 + $0x28] sm:$0xff] %v1555_v33   ;;  %v1026_v39 = vadd.f32 %v2385_v6, %v858_v34  ;;  %v861_v40 = vadd.f32 %v860_v37, %v432_v36  ;;  %v1895_v41 = vpop.f32.mrb[27].mxu1 }
 0x12a   :  { %v1027_v42 = vadd.f32 %v2385_v6, %v861_v40  ;;  %v1075_v43 = vmax.f32 %v1026_v39, 0.0 }
 0x12c   :  { %v1076_v44 = vmax.f32 %v1027_v42, 0.0 }
 0x12d   :  { %v437_v45 = vpop.f32.mrb[28].mxu0  ;;  %v865_v46 = vpop.f32.mrb[28].mxu1 }
 0x12e   :  { %v1782_v47 = vpop.f32.mrb[29].mxu0  ;;  %v1560_v48 = vpack.c.bf16 %v1076_v44, %v1075_v43  ;;  %v866_v49 = vadd.f32 %v865_v46, %v437_v45  ;;  %v1898_v50 = vpop.f32.mrb[29].mxu1 }
 0x12f   :  { %v440_v51 = vpop.f32.mrb[30].mxu0  ;;  %v868_v52 = vpop.f32.mrb[30].mxu1 }
 0x130   :  { %v1783_v53 = vpop.f32.mrb[31].mxu0  ;;  %1652 = vst [vmem:[%s2516_s5 + $0x30] sm:$0xff] %v1560_v48   ;;  %v1028_v54 = vadd.f32 %v2385_v6, %v866_v49  ;;  %v869_v55 = vadd.f32 %v868_v52, %v440_v51  ;;  %v1899_v56 = vpop.f32.mrb[31].mxu1 }
 0x132   :  { %v1029_v57 = vadd.f32 %v2385_v6, %v869_v55  ;;  %v1077_v58 = vmax.f32 %v1028_v54, 0.0 }
 0x134   :  { %v1078_v59 = vmax.f32 %v1029_v57, 0.0 }
 0x135   :  { %v445_v60 = vpop.f32.mrb[32].mxu0  ;;  %v873_v61 = vpop.f32.mrb[32].mxu1 }
 0x136   :  { %v1786_v62 = vpop.f32.mrb[33].mxu0  ;;  %v1565_v63 = vpack.c.bf16 %v1078_v59, %v1077_v58  ;;  %v874_v1 = vadd.f32 %v873_v61, %v445_v60  ;;  %v1902_v2 = vpop.f32.mrb[33].mxu1 }
 0x137   :  { %v448_v3 = vpop.f32.mrb[34].mxu0  ;;  %v876_v4 = vpop.f32.mrb[34].mxu1 }
 0x138   :  { %v1787_v5 = vpop.f32.mrb[35].mxu0  ;;  %1653 = vst [vmem:[%s2516_s5 + $0x38] sm:$0xff] %v1565_v63   ;;  %v1030_v7 = vadd.f32 %v2385_v6, %v874_v1  ;;  %v877_v8 = vadd.f32 %v876_v4, %v448_v3  ;;  %v1903_v0 = vpop.f32.mrb[35].mxu1 }
 0x13a   :  { %v1031_v9 = vadd.f32 %v2385_v6, %v877_v8  ;;  %v1079_v10 = vmax.f32 %v1030_v7, 0.0 }
 0x13c   :  { %v1080_v11 = vmax.f32 %v1031_v9, 0.0 }
 0x13d   :  { %v453_v12 = vpop.f32.mrb[36].mxu0  ;;  %v881_v13 = vpop.f32.mrb[36].mxu1 }
 0x13e   :  { %v1790_v14 = vpop.f32.mrb[37].mxu0  ;;  %v1570_v15 = vpack.c.bf16 %v1080_v11, %v1079_v10  ;;  %v882_v16 = vadd.f32 %v881_v13, %v453_v12  ;;  %v1906_v17 = vpop.f32.mrb[37].mxu1 }
 0x13f   :  { %v456_v18 = vpop.f32.mrb[38].mxu0  ;;  %v884_v19 = vpop.f32.mrb[38].mxu1 }
 0x140   :  { %v1791_v20 = vpop.f32.mrb[39].mxu0  ;;  %1654 = vst [vmem:[%s2516_s5 + $0x40] sm:$0xff] %v1570_v15   ;;  %v1032_v21 = vadd.f32 %v2385_v6, %v882_v16  ;;  %v885_v22 = vadd.f32 %v884_v19, %v456_v18  ;;  %v1907_v23 = vpop.f32.mrb[39].mxu1 }
 0x142   :  { %v1033_v24 = vadd.f32 %v2385_v6, %v885_v22  ;;  %v1081_v25 = vmax.f32 %v1032_v21, 0.0 }
 0x144   :  { %v1082_v26 = vmax.f32 %v1033_v24, 0.0 }
 0x145   :  { %v461_v27 = vpop.f32.mrb[40].mxu0  ;;  %v889_v28 = vpop.f32.mrb[40].mxu1 }
 0x146   :  { %v1794_v29 = vpop.f32.mrb[41].mxu0  ;;  %v1575_v30 = vpack.c.bf16 %v1082_v26, %v1081_v25  ;;  %v890_v31 = vadd.f32 %v889_v28, %v461_v27  ;;  %v1910_v32 = vpop.f32.mrb[41].mxu1 }
 0x147   :  { %v464_v33 = vpop.f32.mrb[42].mxu0  ;;  %v892_v34 = vpop.f32.mrb[42].mxu1 }
 0x148   :  { %v1795_v35 = vpop.f32.mrb[43].mxu0  ;;  %1655 = vst [vmem:[%s2516_s5 + $0x48] sm:$0xff] %v1575_v30   ;;  %v1034_v36 = vadd.f32 %v2385_v6, %v890_v31  ;;  %v893_v37 = vadd.f32 %v892_v34, %v464_v33  ;;  %v1911_v38 = vpop.f32.mrb[43].mxu1 }
 0x14a   :  { %v1035_v39 = vadd.f32 %v2385_v6, %v893_v37  ;;  %v1083_v40 = vmax.f32 %v1034_v36, 0.0 }
 0x14c   :  { %v1084_v41 = vmax.f32 %v1035_v39, 0.0 }
 0x14d   :  { %v469_v42 = vpop.f32.mrb[44].mxu0  ;;  %v897_v43 = vpop.f32.mrb[44].mxu1 }
 0x14e   :  { %v1798_v44 = vpop.f32.mrb[45].mxu0  ;;  %v1580_v45 = vpack.c.bf16 %v1084_v41, %v1083_v40  ;;  %v898_v46 = vadd.f32 %v897_v43, %v469_v42  ;;  %v1914_v47 = vpop.f32.mrb[45].mxu1 }
 0x14f   :  { %v472_v48 = vpop.f32.mrb[46].mxu0  ;;  %v900_v49 = vpop.f32.mrb[46].mxu1 }
 0x150   :  { %v1799_v50 = vpop.f32.mrb[47].mxu0  ;;  %1656 = vst [vmem:[%s2516_s5 + $0x50] sm:$0xff] %v1580_v45   ;;  %v1036_v51 = vadd.f32 %v2385_v6, %v898_v46  ;;  %v901_v52 = vadd.f32 %v900_v49, %v472_v48  ;;  %v1915_v53 = vpop.f32.mrb[47].mxu1 }
 0x152   :  { %v1037_v54 = vadd.f32 %v2385_v6, %v901_v52  ;;  %v1085_v55 = vmax.f32 %v1036_v51, 0.0 }
 0x154   :  { %v1086_v56 = vmax.f32 %v1037_v54, 0.0 }
 0x155   :  { %v477_v57 = vpop.f32.mrb[48].mxu0  ;;  %v905_v58 = vpop.f32.mrb[48].mxu1 }
 0x156   :  { %v1802_v59 = vpop.f32.mrb[49].mxu0  ;;  %v1585_v60 = vpack.c.bf16 %v1086_v56, %v1085_v55  ;;  %v906_v61 = vadd.f32 %v905_v58, %v477_v57  ;;  %v1918_v62 = vpop.f32.mrb[49].mxu1 }
 0x157   :  { %v480_v63 = vpop.f32.mrb[50].mxu0  ;;  %v908_v1 = vpop.f32.mrb[50].mxu1 }
 0x158   :  { %v1803_v2 = vpop.f32.mrb[51].mxu0  ;;  %1657 = vst [vmem:[%s2516_s5 + $0x58] sm:$0xff] %v1585_v60   ;;  %v1038_v3 = vadd.f32 %v2385_v6, %v906_v61  ;;  %v909_v4 = vadd.f32 %v908_v1, %v480_v63  ;;  %v1919_v5 = vpop.f32.mrb[51].mxu1 }
 0x15a   :  { %v1039_v7 = vadd.f32 %v2385_v6, %v909_v4  ;;  %v1087_v8 = vmax.f32 %v1038_v3, 0.0 }
 0x15c   :  { %v1088_v0 = vmax.f32 %v1039_v7, 0.0 }
 0x15d   :  { %v485_v9 = vpop.f32.mrb[52].mxu0  ;;  %v913_v10 = vpop.f32.mrb[52].mxu1 }
 0x15e   :  { %v1806_v11 = vpop.f32.mrb[53].mxu0  ;;  %v1590_v12 = vpack.c.bf16 %v1088_v0, %v1087_v8  ;;  %v914_v13 = vadd.f32 %v913_v10, %v485_v9  ;;  %v1922_v14 = vpop.f32.mrb[53].mxu1 }
 0x15f   :  { %v488_v15 = vpop.f32.mrb[54].mxu0  ;;  %v916_v16 = vpop.f32.mrb[54].mxu1 }
 0x160   :  { %v1807_v17 = vpop.f32.mrb[55].mxu0  ;;  %1658 = vst [vmem:[%s2516_s5 + $0x60] sm:$0xff] %v1590_v12   ;;  %v1040_v18 = vadd.f32 %v2385_v6, %v914_v13  ;;  %v917_v19 = vadd.f32 %v916_v16, %v488_v15  ;;  %v1923_v20 = vpop.f32.mrb[55].mxu1 }
 0x162   :  { %v1041_v21 = vadd.f32 %v2385_v6, %v917_v19  ;;  %v1089_v22 = vmax.f32 %v1040_v18, 0.0 }
 0x164   :  { %v1090_v23 = vmax.f32 %v1041_v21, 0.0 }
 0x165   :  { %v493_v24 = vpop.f32.mrb[56].mxu0  ;;  %v921_v25 = vpop.f32.mrb[56].mxu1 }
 0x166   :  { %v1810_v26 = vpop.f32.mrb[57].mxu0  ;;  %v1595_v27 = vpack.c.bf16 %v1090_v23, %v1089_v22  ;;  %v922_v28 = vadd.f32 %v921_v25, %v493_v24  ;;  %v1926_v29 = vpop.f32.mrb[57].mxu1 }
 0x167   :  { %v496_v30 = vpop.f32.mrb[58].mxu0  ;;  %v924_v31 = vpop.f32.mrb[58].mxu1 }
 0x168   :  { %v1811_v32 = vpop.f32.mrb[59].mxu0  ;;  %1659 = vst [vmem:[%s2516_s5 + $0x68] sm:$0xff] %v1595_v27   ;;  %v1042_v33 = vadd.f32 %v2385_v6, %v922_v28  ;;  %v925_v34 = vadd.f32 %v924_v31, %v496_v30  ;;  %v1927_v35 = vpop.f32.mrb[59].mxu1 }
 0x16a   :  { %v1043_v36 = vadd.f32 %v2385_v6, %v925_v34  ;;  %v1091_v37 = vmax.f32 %v1042_v33, 0.0 }
 0x16c   :  { %v1092_v38 = vmax.f32 %v1043_v36, 0.0 }
 0x16d   :  { %v501_v39 = vpop.f32.mrb[60].mxu0  ;;  %v929_v40 = vpop.f32.mrb[60].mxu1 }
 0x16e   :  { %v1814_v41 = vpop.f32.mrb[61].mxu0  ;;  %v1600_v42 = vpack.c.bf16 %v1092_v38, %v1091_v37  ;;  %v930_v43 = vadd.f32 %v929_v40, %v501_v39  ;;  %v1930_v44 = vpop.f32.mrb[61].mxu1 }
 0x16f   :  { %v504_v45 = vpop.f32.mrb[62].mxu0  ;;  %v932_v46 = vpop.f32.mrb[62].mxu1 }
 0x170   :  { %v1815_v47 = vpop.f32.mrb[63].mxu0  ;;  %1660 = vst [vmem:[%s2516_s5 + $0x70] sm:$0xff] %v1600_v42   ;;  %v1044_v48 = vadd.f32 %v2385_v6, %v930_v43  ;;  %v933_v49 = vadd.f32 %v932_v46, %v504_v45  ;;  %v1931_v50 = vpop.f32.mrb[63].mxu1 }
 0x172   :  { %v1045_v51 = vadd.f32 %v2385_v6, %v933_v49  ;;  %v1093_v52 = vmax.f32 %v1044_v48, 0.0 }
 0x174   :  { %v1094_v53 = vmax.f32 %v1045_v51, 0.0 }
 0x175   :  { %v509_v54 = vpop.f32.mrb[64].mxu0  ;;  %v937_v55 = vpop.f32.mrb[64].mxu1 }
 0x176   :  { %v1818_v56 = vpop.f32.mrb[65].mxu0  ;;  %v1605_v57 = vpack.c.bf16 %v1094_v53, %v1093_v52  ;;  %v938_v58 = vadd.f32 %v937_v55, %v509_v54  ;;  %v1934_v59 = vpop.f32.mrb[65].mxu1 }
 0x177   :  { %v512_v60 = vpop.f32.mrb[66].mxu0  ;;  %v940_v61 = vpop.f32.mrb[66].mxu1 }
 0x178   :  { %v1819_v62 = vpop.f32.mrb[67].mxu0  ;;  %1661 = vst [vmem:[%s2516_s5 + $0x78] sm:$0xff] %v1605_v57   ;;  %v1046_v63 = vadd.f32 %v2385_v6, %v938_v58  ;;  %v941_v1 = vadd.f32 %v940_v61, %v512_v60  ;;  %v1935_v2 = vpop.f32.mrb[67].mxu1 }
 0x17a   :  { %v1047_v3 = vadd.f32 %v2385_v6, %v941_v1  ;;  %v1095_v4 = vmax.f32 %v1046_v63, 0.0 }
 0x17c   :  { %v1096_v5 = vmax.f32 %v1047_v3, 0.0 }
 0x17d   :  { %v517_v7 = vpop.f32.mrb[68].mxu0  ;;  %v945_v8 = vpop.f32.mrb[68].mxu1 }
 0x17e   :  { %v1822_v0 = vpop.f32.mrb[69].mxu0  ;;  %v1610_v9 = vpack.c.bf16 %v1096_v5, %v1095_v4  ;;  %v946_v10 = vadd.f32 %v945_v8, %v517_v7  ;;  %v1938_v11 = vpop.f32.mrb[69].mxu1 }
 0x17f   :  { %v520_v12 = vpop.f32.mrb[70].mxu0  ;;  %v948_v13 = vpop.f32.mrb[70].mxu1 }
 0x180   :  { %v1823_v14 = vpop.f32.mrb[71].mxu0  ;;  %1662 = vst [vmem:[%s2516_s5 + $0x80] sm:$0xff] %v1610_v9   ;;  %v1048_v15 = vadd.f32 %v2385_v6, %v946_v10  ;;  %v949_v16 = vadd.f32 %v948_v13, %v520_v12  ;;  %v1939_v17 = vpop.f32.mrb[71].mxu1 }
 0x182   :  { %v1049_v18 = vadd.f32 %v2385_v6, %v949_v16  ;;  %v1097_v19 = vmax.f32 %v1048_v15, 0.0 }
 0x184   :  { %v1098_v20 = vmax.f32 %v1049_v18, 0.0 }
 0x185   :  { %v525_v21 = vpop.f32.mrb[72].mxu0  ;;  %v953_v22 = vpop.f32.mrb[72].mxu1 }
 0x186   :  { %v1826_v23 = vpop.f32.mrb[73].mxu0  ;;  %v1615_v24 = vpack.c.bf16 %v1098_v20, %v1097_v19  ;;  %v954_v25 = vadd.f32 %v953_v22, %v525_v21  ;;  %v1942_v26 = vpop.f32.mrb[73].mxu1 }
 0x187   :  { %v528_v27 = vpop.f32.mrb[74].mxu0  ;;  %v956_v28 = vpop.f32.mrb[74].mxu1 }
 0x188   :  { %v1827_v29 = vpop.f32.mrb[75].mxu0  ;;  %1663 = vst [vmem:[%s2516_s5 + $0x88] sm:$0xff] %v1615_v24   ;;  %v1050_v30 = vadd.f32 %v2385_v6, %v954_v25  ;;  %v957_v31 = vadd.f32 %v956_v28, %v528_v27  ;;  %v1943_v32 = vpop.f32.mrb[75].mxu1 }
 0x18a   :  { %v1051_v33 = vadd.f32 %v2385_v6, %v957_v31  ;;  %v1099_v34 = vmax.f32 %v1050_v30, 0.0 }
 0x18c   :  { %v1100_v35 = vmax.f32 %v1051_v33, 0.0 }
 0x18d   :  { %v533_v36 = vpop.f32.mrb[76].mxu0  ;;  %v961_v37 = vpop.f32.mrb[76].mxu1 }
 0x18e   :  { %v1830_v38 = vpop.f32.mrb[77].mxu0  ;;  %v1620_v39 = vpack.c.bf16 %v1100_v35, %v1099_v34  ;;  %v962_v40 = vadd.f32 %v961_v37, %v533_v36  ;;  %v1946_v41 = vpop.f32.mrb[77].mxu1 }
 0x18f   :  { %v536_v42 = vpop.f32.mrb[78].mxu0  ;;  %v964_v43 = vpop.f32.mrb[78].mxu1 }
 0x190   :  { %v1831_v44 = vpop.f32.mrb[79].mxu0  ;;  %1664 = vst [vmem:[%s2516_s5 + $0x90] sm:$0xff] %v1620_v39   ;;  %v1052_v45 = vadd.f32 %v2385_v6, %v962_v40  ;;  %v965_v46 = vadd.f32 %v964_v43, %v536_v42  ;;  %v1947_v47 = vpop.f32.mrb[79].mxu1 }
 0x192   :  { %v1053_v48 = vadd.f32 %v2385_v6, %v965_v46  ;;  %v1101_v49 = vmax.f32 %v1052_v45, 0.0 }
 0x194   :  { %v1102_v50 = vmax.f32 %v1053_v48, 0.0 }
 0x195   :  { %v541_v51 = vpop.f32.mrb[80].mxu0  ;;  %v969_v52 = vpop.f32.mrb[80].mxu1 }
 0x196   :  { %v1834_v53 = vpop.f32.mrb[81].mxu0  ;;  %v1625_v54 = vpack.c.bf16 %v1102_v50, %v1101_v49  ;;  %v970_v55 = vadd.f32 %v969_v52, %v541_v51  ;;  %v1950_v56 = vpop.f32.mrb[81].mxu1 }
 0x197   :  { %v544_v57 = vpop.f32.mrb[82].mxu0  ;;  %v972_v58 = vpop.f32.mrb[82].mxu1 }
 0x198   :  { %v1835_v59 = vpop.f32.mrb[83].mxu0  ;;  %1665 = vst [vmem:[%s2516_s5 + $0x98] sm:$0xff] %v1625_v54   ;;  %v1054_v60 = vadd.f32 %v2385_v6, %v970_v55  ;;  %v973_v61 = vadd.f32 %v972_v58, %v544_v57  ;;  %v1951_v62 = vpop.f32.mrb[83].mxu1 }
 0x19a   :  { %v1055_v63 = vadd.f32 %v2385_v6, %v973_v61  ;;  %v1103_v1 = vmax.f32 %v1054_v60, 0.0 }
 0x19c   :  { %v1104_v2 = vmax.f32 %v1055_v63, 0.0 }
 0x19d   :  { %v549_v3 = vpop.f32.mrb[84].mxu0  ;;  %v977_v4 = vpop.f32.mrb[84].mxu1 }
 0x19e   :  { %v1838_v5 = vpop.f32.mrb[85].mxu0  ;;  %v1630_v7 = vpack.c.bf16 %v1104_v2, %v1103_v1  ;;  %v978_v8 = vadd.f32 %v977_v4, %v549_v3  ;;  %v1954_v0 = vpop.f32.mrb[85].mxu1 }
 0x19f   :  { %v552_v9 = vpop.f32.mrb[86].mxu0  ;;  %v980_v10 = vpop.f32.mrb[86].mxu1 }
 0x1a0   :  { %v1839_v11 = vpop.f32.mrb[87].mxu0  ;;  %1666 = vst [vmem:[%s2516_s5 + $0xa0] sm:$0xff] %v1630_v7   ;;  %v1056_v12 = vadd.f32 %v2385_v6, %v978_v8  ;;  %v981_v13 = vadd.f32 %v980_v10, %v552_v9  ;;  %v1955_v14 = vpop.f32.mrb[87].mxu1 }
 0x1a2   :  { %v1057_v15 = vadd.f32 %v2385_v6, %v981_v13  ;;  %v1105_v16 = vmax.f32 %v1056_v12, 0.0 }
 0x1a4   :  { %v1106_v17 = vmax.f32 %v1057_v15, 0.0 }
 0x1a5   :  { %v557_v18 = vpop.f32.mrb[88].mxu0  ;;  %v985_v19 = vpop.f32.mrb[88].mxu1 }
 0x1a6   :  { %v1842_v20 = vpop.f32.mrb[89].mxu0  ;;  %v1635_v21 = vpack.c.bf16 %v1106_v17, %v1105_v16  ;;  %v986_v22 = vadd.f32 %v985_v19, %v557_v18  ;;  %v1958_v23 = vpop.f32.mrb[89].mxu1 }
 0x1a7   :  { %v560_v24 = vpop.f32.mrb[90].mxu0  ;;  %v988_v25 = vpop.f32.mrb[90].mxu1 }
 0x1a8   :  { %v1843_v26 = vpop.f32.mrb[91].mxu0  ;;  %1667 = vst [vmem:[%s2516_s5 + $0xa8] sm:$0xff] %v1635_v21   ;;  %v1058_v27 = vadd.f32 %v2385_v6, %v986_v22  ;;  %v989_v28 = vadd.f32 %v988_v25, %v560_v24  ;;  %v1959_v29 = vpop.f32.mrb[91].mxu1 }
 0x1aa   :  { %v1059_v30 = vadd.f32 %v2385_v6, %v989_v28  ;;  %v1107_v31 = vmax.f32 %v1058_v27, 0.0 }
 0x1ac   :  { %v1108_v32 = vmax.f32 %v1059_v30, 0.0 }
 0x1ad   :  { %v565_v33 = vpop.f32.mrb[92].mxu0  ;;  %v993_v34 = vpop.f32.mrb[92].mxu1 }
 0x1ae   :  { %v1846_v35 = vpop.f32.mrb[93].mxu0  ;;  %v1640_v36 = vpack.c.bf16 %v1108_v32, %v1107_v31  ;;  %v994_v37 = vadd.f32 %v993_v34, %v565_v33  ;;  %v1962_v38 = vpop.f32.mrb[93].mxu1 }
 0x1af   :  { %v568_v39 = vpop.f32.mrb[94].mxu0  ;;  %v996_v40 = vpop.f32.mrb[94].mxu1 }
 0x1b0   :  { %v1847_v41 = vpop.f32.mrb[95].mxu0  ;;  %1668 = vst [vmem:[%s2516_s5 + $0xb0] sm:$0xff] %v1640_v36   ;;  %v1060_v42 = vadd.f32 %v2385_v6, %v994_v37  ;;  %v997_v43 = vadd.f32 %v996_v40, %v568_v39  ;;  %v1963_v44 = vpop.f32.mrb[95].mxu1 }
 0x1b2   :  { %v1061_v45 = vadd.f32 %v2385_v6, %v997_v43  ;;  %v1109_v46 = vmax.f32 %v1060_v42, 0.0 }
 0x1b4   :  { %v1110_v47 = vmax.f32 %v1061_v45, 0.0 }
 0x1b5   :  { %v573_v48 = vpop.f32.mrb[96].mxu0  ;;  %v1001_v49 = vpop.f32.mrb[96].mxu1 }
 0x1b6   :  { %v1850_v50 = vpop.f32.mrb[97].mxu0  ;;  %v1645_v51 = vpack.c.bf16 %v1110_v47, %v1109_v46  ;;  %v1002_v52 = vadd.f32 %v1001_v49, %v573_v48  ;;  %v1966_v53 = vpop.f32.mrb[97].mxu1 }
 0x1b7   :  { %v576_v54 = vpop.f32.mrb[98].mxu0  ;;  %v1004_v55 = vpop.f32.mrb[98].mxu1 }
 0x1b8   :  { %v1851_v56 = vpop.f32.mrb[99].mxu0  ;;  %1669 = vst [vmem:[%s2516_s5 + $0xb8] sm:$0xff] %v1645_v51   ;;  %v1062_v57 = vadd.f32 %v2385_v6, %v1002_v52  ;;  %v1967_v58 = vpop.f32.mrb[99].mxu1 }
 0x1ba   :  { %v1111_v59 = vmax.f32 %v1062_v57, 0.0 }
 0x1bc   :  { %v1526_v60 = vpack.c.bf16 %v1111_v59, %v1111_v59 }
 0x1be   :  { %1357 = vst [vmem:[%s2516_s5 + $0xc0] sm:$0xf] %v1526_v60 }

</bundles_post_ra>
